<compile_context>
chip_gen: v6e
topology: v6e:2x2x1
jax: 0.10.0
libtpu: 0.0.40
codegen_flags: <defaults>
</compile_context>

<pallas_src>
import math

import jax
import jax.numpy as jnp
from jax import lax
from jax.experimental import pallas as pl
from jax.experimental.pallas import tpu as pltpu  # noqa: F401  (TPU backend)

# ----------------------------- configuration --------------------------------
DIM = 32                    # query_dim
N_HEADS = 4                 # heads
D_HEAD = 8                  # dim_head
INNER = N_HEADS * D_HEAD    # 32
FF_INNER = 4 * DIM          # FeedForward mult=4 -> 128
B = 2
SEQ = 8
LN_EPS = 1e-5
SCALE = D_HEAD ** (-0.5)

BN = B * SEQ                # 16 activation rows
HBN = N_HEADS * BN          # 64 head-stacked q/k/v rows
LOG2_SEQ = SEQ.bit_length() - 1
assert SEQ == 1 << LOG2_SEQ
GROUPS = 128 // DIM         # 4 row groups packed per 128-lane output row
ROWS_PER_GROUP = BN // GROUPS   # 4


# ------------------------- shared math helpers -------------------------------
def _layernorm(x, gamma, beta):
    mean = jnp.mean(x, axis=-1, keepdims=True)
    var = jnp.mean((x - mean) ** 2, axis=-1, keepdims=True)
    return (x - mean) * lax.rsqrt(var + LN_EPS) * gamma + beta


def _gelu(x):
    # exact (erf) GELU, matching torch.nn.GELU() default
    return 0.5 * x * (1.0 + lax.erf(x * (1.0 / math.sqrt(2.0))))


# ------------------------------ Pallas kernel --------------------------------
def block_kernel(x_ref, wqkv_ref, wo_ref, wf1_ref, wf2_ref, ln_ref, out_ref):
    x = x_ref[...]                                            # (BN, DIM) f32

    # Block-diagonal mask for the head/batch-stacked score matrix: stacked row
    # s = h*BN + b*SEQ + n belongs to group s >> LOG2_SEQ = h*B + b; scores are
    # valid only within the same (head, batch) group.  Built once, reused twice.
    grp_r = jnp.right_shift(lax.broadcasted_iota(jnp.int32, (HBN, HBN), 0), LOG2_SEQ)
    grp_c = jnp.right_shift(lax.broadcasted_iota(jnp.int32, (HBN, HBN), 1), LOG2_SEQ)
    mask = grp_r == grp_c

    def attention(h_in, wqkv, wo, bo):
        # fused q/k/v projection (to_q scale pre-folded into wqkv): (BN, 3*INNER)
        qkv = jnp.dot(h_in, wqkv, preferred_element_type=jnp.float32)

        def stack_heads(base):
            # (BN, INNER) head-slices stacked along rows -> (HBN, D_HEAD)
            return jnp.concatenate(
                [qkv[:, base + h * D_HEAD: base + (h + 1) * D_HEAD]
                 for h in range(N_HEADS)], axis=0)

        q = stack_heads(0)
        k = stack_heads(INNER)
        v = stack_heads(2 * INNER)

        # one score matmul for all heads & batches, one masked softmax
        sim = lax.dot_general(q, k, (((1,), (1,)), ((), ())),
                              preferred_element_type=jnp.float32)   # (HBN, HBN)
        sim = jnp.where(mask, sim, jnp.float32(-1e30))
        m = jnp.max(sim, axis=-1, keepdims=True)
        e = jnp.exp(sim - m)                                   # masked -> exactly 0
        attn = e * pl.reciprocal(jnp.sum(e, axis=-1, keepdims=True), approx=True)

        o = jnp.dot(attn, v, preferred_element_type=jnp.float32)    # (HBN, D_HEAD)
        # un-stack heads back to (BN, INNER) = 'b n (h d)'
        o = jnp.concatenate(
            [o[h * BN:(h + 1) * BN, :] for h in range(N_HEADS)], axis=1)
        return jnp.dot(o, wo, preferred_element_type=jnp.float32) + bo

    # ---- x = attn1(norm1(x)) + x ----
    h1 = _layernorm(x, ln_ref[0:1, :], ln_ref[1:2, :])
    x = attention(h1, wqkv_ref[0:DIM, :], wo_ref[0:INNER, :],
                  wo_ref[2 * INNER:2 * INNER + 1, :]) + x

    # ---- x = attn2(norm2(x)) + x  (context=None -> self attention) ----
    h2 = _layernorm(x, ln_ref[2:3, :], ln_ref[3:4, :])
    x = attention(h2, wqkv_ref[DIM:2 * DIM, :], wo_ref[INNER:2 * INNER, :],
                  wo_ref[2 * INNER + 1:2 * INNER + 2, :]) + x

    # ---- x = ff(norm3(x)) + x ----
    h3 = _layernorm(x, ln_ref[4:5, :], ln_ref[5:6, :])
    hid = _gelu(jnp.dot(h3, wf1_ref[0:DIM, :], preferred_element_type=jnp.float32)
                + wf1_ref[DIM:DIM + 1, :])
    y = (jnp.dot(hid, wf2_ref[0:FF_INNER, :], preferred_element_type=jnp.float32)
         + wf2_ref[FF_INNER:FF_INNER + 1, :] + x)

    # lane-dense store: out[r, g*DIM:(g+1)*DIM] = y[g*ROWS_PER_GROUP + r]
    out_ref[...] = jnp.concatenate(
        [y[g * ROWS_PER_GROUP:(g + 1) * ROWS_PER_GROUP, :] for g in range(GROUPS)],
        axis=1)


# ----------------------------- wrapper / packing ------------------------------
def pack_params(p):
    wqkv = jnp.concatenate([
        jnp.concatenate([p["wq1"] * SCALE, p["wk1"], p["wv1"]], axis=1),
        jnp.concatenate([p["wq2"] * SCALE, p["wk2"], p["wv2"]], axis=1)],
        axis=0)                                                        # (2*DIM, 96)
    wo = jnp.concatenate([p["wo1"], p["wo2"], p["bo1"], p["bo2"]], axis=0)   # (66, 32)
    wf1 = jnp.concatenate([p["wf1"], p["bf1"]], axis=0)                      # (33, 128)
    wf2 = jnp.concatenate([p["wf2"], p["bf2"]], axis=0)                      # (129, 32)
    ln = jnp.concatenate([p["g1"], p["be1"], p["g2"], p["be2"],
                          p["g3"], p["be3"]], axis=0)                        # (6, 32)
    return wqkv, wo, wf1, wf2, ln


def basic_transformer_block(x, params):
    """x: (B, SEQ, DIM) float32. params: dict (see init_params)."""
    b, n, d = x.shape
    assert d == DIM and b * n == BN
    wqkv, wo, wf1, wf2, ln = pack_params(params)
    x2d = x.reshape(b * n, d)

    operands = (x2d, wqkv, wo, wf1, wf2, ln)
    in_specs = [pl.BlockSpec(op.shape, lambda i: (0, 0)) for op in operands]

    slab = pl.pallas_call(
        block_kernel,
        out_shape=jax.ShapeDtypeStruct((ROWS_PER_GROUP, GROUPS * d), x.dtype),
        grid=(1,),
        in_specs=in_specs,
        out_specs=pl.BlockSpec((ROWS_PER_GROUP, GROUPS * d), lambda i: (0, 0)),
    )(*operands)

    # undo the in-kernel lane packing: slab[r, g*d:(g+1)*d] == y[g*ROWS_PER_GROUP + r]
    y2d = (slab.reshape(ROWS_PER_GROUP, GROUPS, d)
               .transpose(1, 0, 2)
               .reshape(b * n, d))
    return y2d.reshape(b, n, d)


# ----------------------------- parameter init --------------------------------
def init_params(key):
    ks = jax.random.split(key, 16)
    std = 0.02

    def lin(k, fan_in, fan_out):
        return jax.random.normal(k, (fan_in, fan_out), jnp.float32) * std

    def vec(k, n):
        return jax.random.normal(k, (1, n), jnp.float32) * std

    return {
        # LayerNorms (gamma=1, beta=0, like nn.LayerNorm default)
        "g1": jnp.ones((1, DIM), jnp.float32), "be1": jnp.zeros((1, DIM), jnp.float32),
        "g2": jnp.ones((1, DIM), jnp.float32), "be2": jnp.zeros((1, DIM), jnp.float32),
        "g3": jnp.ones((1, DIM), jnp.float32), "be3": jnp.zeros((1, DIM), jnp.float32),
        # attn1 (to_q/to_k/to_v have no bias; to_out has bias)
        "wq1": lin(ks[0], DIM, INNER), "wk1": lin(ks[1], DIM, INNER),
        "wv1": lin(ks[2], DIM, INNER), "wo1": lin(ks[3], INNER, DIM),
        "bo1": vec(ks[4], DIM),
        # attn2 (context_dim=None -> context_dim = query_dim = DIM)
        "wq2": lin(ks[5], DIM, INNER), "wk2": lin(ks[6], DIM, INNER),
        "wv2": lin(ks[7], DIM, INNER), "wo2": lin(ks[8], INNER, DIM),
        "bo2": vec(ks[9], DIM),
        # FeedForward
        "wf1": lin(ks[10], DIM, FF_INNER), "bf1": vec(ks[11], FF_INNER),
        "wf2": lin(ks[12], FF_INNER, DIM), "bf2": vec(ks[13], DIM),
    }


# ----------------------------- pure-JAX reference ----------------------------
def _attention_ref(h_in, wq, wk, wv, wo, bo):
    q = jnp.dot(h_in, wq)
    k = jnp.dot(h_in, wk)
    v = jnp.dot(h_in, wv)
    outs = []
    for h in range(N_HEADS):
        sl = slice(h * D_HEAD, (h + 1) * D_HEAD)
        sim = (q[:, sl] @ k[:, sl].T) * SCALE
        sim = sim - jnp.max(sim, axis=-1, keepdims=True)
        e = jnp.exp(sim)
        attn = e / jnp.sum(e, axis=-1, keepdims=True)
        outs.append(attn @ v[:, sl])
    return jnp.concatenate(outs, axis=-1) @ wo + bo


def reference_forward(x, p):
    def one(xb):
        xb = _attention_ref(_layernorm(xb, p["g1"], p["be1"]),
                            p["wq1"], p["wk1"], p["wv1"], p["wo1"], p["bo1"]) + xb
        xb = _attention_ref(_layernorm(xb, p["g2"], p["be2"]),
                            p["wq2"], p["wk2"], p["wv2"], p["wo2"], p["bo2"]) + xb
        h3 = _layernorm(xb, p["g3"], p["be3"])
        hid = _gelu(jnp.dot(h3, p["wf1"]) + p["bf1"])
        return jnp.dot(hid, p["wf2"]) + p["bf2"] + xb
    return jax.vmap(one)(x)


# ----------------------------------- main -------------------------------------
if __name__ == "__main__":
    key = jax.random.PRNGKey(0)
    kx, kp = jax.random.split(key)
    x = jax.random.normal(kx, (B, SEQ, DIM), jnp.float32)
    params = init_params(kp)

    out = jax.block_until_ready(basic_transformer_block(x, params))
    ref = jax.block_until_ready(reference_forward(x, params))

    assert out.shape == (B, SEQ, DIM)
    err = float(jnp.max(jnp.abs(out - ref)))
    assert jnp.allclose(out, ref, rtol=2e-3, atol=2e-3), f"max abs err = {err}"

    print("KERNEL_OK")
</pallas_src>

<mosaic_0001>
module attributes {stable_mosaic.version = 11 : i64} {
  func.func @block_kernel(%arg0: i32, %arg1: memref<16x32xf32, #tpu.memory_space<vmem>>, %arg2: memref<64x96xf32, #tpu.memory_space<vmem>>, %arg3: memref<66x32xf32, #tpu.memory_space<vmem>>, %arg4: memref<33x128xf32, #tpu.memory_space<vmem>>, %arg5: memref<129x32xf32, #tpu.memory_space<vmem>>, %arg6: memref<6x32xf32, #tpu.memory_space<vmem>>, %arg7: memref<4x128xf32, #tpu.memory_space<vmem>>) attributes {dimension_semantics = [#tpu.dimension_semantics<arbitrary>], iteration_bounds = array<i64: 1>, scalar_prefetch = 0 : i64, scratch_operands = 0 : i64, tpu.core_type = #tpu.core_type<tc>, window_params = [{pipeline_mode = #tpu.pipeline_mode<synchronous>, transform_indices = @transform_0, window_bounds = array<i64: 16, 32>}, {pipeline_mode = #tpu.pipeline_mode<synchronous>, transform_indices = @transform_1, window_bounds = array<i64: 64, 96>}, {pipeline_mode = #tpu.pipeline_mode<synchronous>, transform_indices = @transform_2, window_bounds = array<i64: 66, 32>}, {pipeline_mode = #tpu.pipeline_mode<synchronous>, transform_indices = @transform_3, window_bounds = array<i64: 33, 128>}, {pipeline_mode = #tpu.pipeline_mode<synchronous>, transform_indices = @transform_4, window_bounds = array<i64: 129, 32>}, {pipeline_mode = #tpu.pipeline_mode<synchronous>, transform_indices = @transform_5, window_bounds = array<i64: 6, 32>}, {pipeline_mode = #tpu.pipeline_mode<synchronous>, transform_indices = @transform_6, window_bounds = array<i64: 4, 128>}]} {
    %c0 = arith.constant 0 : index
    %c0_0 = arith.constant 0 : index
    %0 = vector.load %arg1[%c0, %c0_0] : memref<16x32xf32, #tpu.memory_space<vmem>>, vector<16x32xf32>
    %1 = tpu.iota {dimensions = array<i32: 0>} : vector<64x64xi32>
    %c3_i32 = arith.constant 3 : i32
    %2 = vector.broadcast %c3_i32 : i32 to vector<64x64xi32>
    %3 = arith.shrsi %1, %2 : vector<64x64xi32>
    %4 = tpu.iota {dimensions = array<i32: 1>} : vector<64x64xi32>
    %c3_i32_1 = arith.constant 3 : i32
    %5 = vector.broadcast %c3_i32_1 : i32 to vector<64x64xi32>
    %6 = arith.shrsi %4, %5 : vector<64x64xi32>
    %7 = arith.cmpi eq, %3, %6 : vector<64x64xi32>
    %c0_2 = arith.constant 0 : index
    %c0_3 = arith.constant 0 : index
    %8 = vector.load %arg6[%c0_2, %c0_3] : memref<6x32xf32, #tpu.memory_space<vmem>>, vector<1x32xf32>
    %c1 = arith.constant 1 : index
    %c0_4 = arith.constant 0 : index
    %9 = vector.load %arg6[%c1, %c0_4] : memref<6x32xf32, #tpu.memory_space<vmem>>, vector<1x32xf32>
    %cst = arith.constant dense<0.000000e+00> : vector<16xf32>
    %10 = vector.multi_reduction <add>, %0, %cst [1] : vector<16x32xf32> to vector<16xf32>
    %11 = vector.shape_cast %10 : vector<16xf32> to vector<16x1xf32>
    %cst_5 = arith.constant 3.200000e+01 : f32
    %12 = vector.broadcast %cst_5 : f32 to vector<16x1xf32>
    %13 = arith.divf %11, %12 : vector<16x1xf32>
    %14 = vector.broadcast %13 : vector<16x1xf32> to vector<16x32xf32>
    %15 = arith.subf %0, %14 : vector<16x32xf32>
    %16 = arith.mulf %15, %15 : vector<16x32xf32>
    %cst_6 = arith.constant dense<0.000000e+00> : vector<16xf32>
    %17 = vector.multi_reduction <add>, %16, %cst_6 [1] : vector<16x32xf32> to vector<16xf32>
    %18 = vector.shape_cast %17 : vector<16xf32> to vector<16x1xf32>
    %cst_7 = arith.constant 3.200000e+01 : f32
    %19 = vector.broadcast %cst_7 : f32 to vector<16x1xf32>
    %20 = arith.divf %18, %19 : vector<16x1xf32>
    %21 = vector.broadcast %13 : vector<16x1xf32> to vector<16x32xf32>
    %22 = arith.subf %0, %21 : vector<16x32xf32>
    %cst_8 = arith.constant 9.99999974E-6 : f32
    %23 = vector.broadcast %cst_8 : f32 to vector<16x1xf32>
    %24 = arith.addf %20, %23 : vector<16x1xf32>
    %25 = math.rsqrt %24 : vector<16x1xf32>
    %26 = vector.broadcast %25 : vector<16x1xf32> to vector<16x32xf32>
    %27 = arith.mulf %22, %26 : vector<16x32xf32>
    %28 = vector.broadcast %8 : vector<1x32xf32> to vector<16x32xf32>
    %29 = arith.mulf %27, %28 : vector<16x32xf32>
    %30 = vector.broadcast %9 : vector<1x32xf32> to vector<16x32xf32>
    %31 = arith.addf %29, %30 : vector<16x32xf32>
    %c0_9 = arith.constant 0 : index
    %c0_10 = arith.constant 0 : index
    %32 = vector.load %arg2[%c0_9, %c0_10] : memref<64x96xf32, #tpu.memory_space<vmem>>, vector<32x96xf32>
    %c0_11 = arith.constant 0 : index
    %c0_12 = arith.constant 0 : index
    %33 = vector.load %arg3[%c0_11, %c0_12] : memref<66x32xf32, #tpu.memory_space<vmem>>, vector<32x32xf32>
    %c64 = arith.constant 64 : index
    %c0_13 = arith.constant 0 : index
    %34 = vector.load %arg3[%c64, %c0_13] : memref<66x32xf32, #tpu.memory_space<vmem>>, vector<1x32xf32>
    %cst_14 = arith.constant dense<0.000000e+00> : vector<16x96xf32>
    %35 = tpu.matmul %31, %32, %cst_14 {dimension_numbers = #tpu.dot_dimension_numbers<[1], [0], [0], [1], [0, 0, 1, 1], [], []>} : vector<16x32xf32>, vector<32x96xf32>, vector<16x96xf32> -> vector<16x96xf32>
    %36 = vector.extract_strided_slice %35 {offsets = [0, 0], sizes = [16, 8], strides = [1, 1]} : vector<16x96xf32> to vector<16x8xf32>
    %37 = vector.extract_strided_slice %35 {offsets = [0, 8], sizes = [16, 8], strides = [1, 1]} : vector<16x96xf32> to vector<16x8xf32>
    %38 = vector.extract_strided_slice %35 {offsets = [0, 16], sizes = [16, 8], strides = [1, 1]} : vector<16x96xf32> to vector<16x8xf32>
    %39 = vector.extract_strided_slice %35 {offsets = [0, 24], sizes = [16, 8], strides = [1, 1]} : vector<16x96xf32> to vector<16x8xf32>
    %40 = tpu.concatenate %36, %37, %38, %39 in 0 : vector<16x8xf32>, vector<16x8xf32>, vector<16x8xf32>, vector<16x8xf32> -> vector<64x8xf32>
    %41 = vector.extract_strided_slice %35 {offsets = [0, 32], sizes = [16, 8], strides = [1, 1]} : vector<16x96xf32> to vector<16x8xf32>
    %42 = vector.extract_strided_slice %35 {offsets = [0, 40], sizes = [16, 8], strides = [1, 1]} : vector<16x96xf32> to vector<16x8xf32>
    %43 = vector.extract_strided_slice %35 {offsets = [0, 48], sizes = [16, 8], strides = [1, 1]} : vector<16x96xf32> to vector<16x8xf32>
    %44 = vector.extract_strided_slice %35 {offsets = [0, 56], sizes = [16, 8], strides = [1, 1]} : vector<16x96xf32> to vector<16x8xf32>
    %45 = tpu.concatenate %41, %42, %43, %44 in 0 : vector<16x8xf32>, vector<16x8xf32>, vector<16x8xf32>, vector<16x8xf32> -> vector<64x8xf32>
    %46 = vector.extract_strided_slice %35 {offsets = [0, 64], sizes = [16, 8], strides = [1, 1]} : vector<16x96xf32> to vector<16x8xf32>
    %47 = vector.extract_strided_slice %35 {offsets = [0, 72], sizes = [16, 8], strides = [1, 1]} : vector<16x96xf32> to vector<16x8xf32>
    %48 = vector.extract_strided_slice %35 {offsets = [0, 80], sizes = [16, 8], strides = [1, 1]} : vector<16x96xf32> to vector<16x8xf32>
    %49 = vector.extract_strided_slice %35 {offsets = [0, 88], sizes = [16, 8], strides = [1, 1]} : vector<16x96xf32> to vector<16x8xf32>
    %50 = tpu.concatenate %46, %47, %48, %49 in 0 : vector<16x8xf32>, vector<16x8xf32>, vector<16x8xf32>, vector<16x8xf32> -> vector<64x8xf32>
    %cst_15 = arith.constant dense<0.000000e+00> : vector<64x64xf32>
    %51 = tpu.matmul %40, %45, %cst_15 {dimension_numbers = #tpu.dot_dimension_numbers<[1], [1], [0], [0], [0, 0, 1, 0], [], []>} : vector<64x8xf32>, vector<64x8xf32>, vector<64x64xf32> -> vector<64x64xf32>
    %cst_16 = arith.constant -1.000000e+30 : f32
    %52 = vector.broadcast %cst_16 : f32 to vector<64x64xf32>
    %53 = arith.select %7, %51, %52 : vector<64x64xi1>, vector<64x64xf32>
    %cst_17 = arith.constant dense<0xFF800000> : vector<64xf32>
    %54 = vector.multi_reduction <maximumf>, %53, %cst_17 [1] : vector<64x64xf32> to vector<64xf32>
    %55 = vector.shape_cast %54 : vector<64xf32> to vector<64x1xf32>
    %56 = vector.broadcast %55 : vector<64x1xf32> to vector<64x64xf32>
    %57 = arith.subf %53, %56 : vector<64x64xf32>
    %58 = math.exp %57 : vector<64x64xf32>
    %cst_18 = arith.constant dense<0.000000e+00> : vector<64xf32>
    %59 = vector.multi_reduction <add>, %58, %cst_18 [1] : vector<64x64xf32> to vector<64xf32>
    %60 = vector.shape_cast %59 : vector<64xf32> to vector<64x1xf32>
    %61 = tpu.reciprocal %60 {approx = true} : vector<64x1xf32> -> vector<64x1xf32>
    %62 = vector.broadcast %61 : vector<64x1xf32> to vector<64x64xf32>
    %63 = arith.mulf %58, %62 : vector<64x64xf32>
    %cst_19 = arith.constant dense<0.000000e+00> : vector<64x8xf32>
    %64 = tpu.matmul %63, %50, %cst_19 {dimension_numbers = #tpu.dot_dimension_numbers<[1], [0], [0], [1], [0, 0, 1, 1], [], []>} : vector<64x64xf32>, vector<64x8xf32>, vector<64x8xf32> -> vector<64x8xf32>
    %65 = vector.extract_strided_slice %64 {offsets = [0, 0], sizes = [16, 8], strides = [1, 1]} : vector<64x8xf32> to vector<16x8xf32>
    %66 = vector.extract_strided_slice %64 {offsets = [16, 0], sizes = [16, 8], strides = [1, 1]} : vector<64x8xf32> to vector<16x8xf32>
    %67 = vector.extract_strided_slice %64 {offsets = [32, 0], sizes = [16, 8], strides = [1, 1]} : vector<64x8xf32> to vector<16x8xf32>
    %68 = vector.extract_strided_slice %64 {offsets = [48, 0], sizes = [16, 8], strides = [1, 1]} : vector<64x8xf32> to vector<16x8xf32>
    %69 = tpu.concatenate %65, %66, %67, %68 in 1 : vector<16x8xf32>, vector<16x8xf32>, vector<16x8xf32>, vector<16x8xf32> -> vector<16x32xf32>
    %cst_20 = arith.constant dense<0.000000e+00> : vector<16x32xf32>
    %70 = tpu.matmul %69, %33, %cst_20 {dimension_numbers = #tpu.dot_dimension_numbers<[1], [0], [0], [1], [0, 0, 1, 1], [], []>} : vector<16x32xf32>, vector<32x32xf32>, vector<16x32xf32> -> vector<16x32xf32>
    %71 = vector.broadcast %34 : vector<1x32xf32> to vector<16x32xf32>
    %72 = arith.addf %70, %71 : vector<16x32xf32>
    %73 = arith.addf %72, %0 : vector<16x32xf32>
    %c2 = arith.constant 2 : index
    %c0_21 = arith.constant 0 : index
    %74 = vector.load %arg6[%c2, %c0_21] : memref<6x32xf32, #tpu.memory_space<vmem>>, vector<1x32xf32>
    %c3 = arith.constant 3 : index
    %c0_22 = arith.constant 0 : index
    %75 = vector.load %arg6[%c3, %c0_22] : memref<6x32xf32, #tpu.memory_space<vmem>>, vector<1x32xf32>
    %cst_23 = arith.constant dense<0.000000e+00> : vector<16xf32>
    %76 = vector.multi_reduction <add>, %73, %cst_23 [1] : vector<16x32xf32> to vector<16xf32>
    %77 = vector.shape_cast %76 : vector<16xf32> to vector<16x1xf32>
    %cst_24 = arith.constant 3.200000e+01 : f32
    %78 = vector.broadcast %cst_24 : f32 to vector<16x1xf32>
    %79 = arith.divf %77, %78 : vector<16x1xf32>
    %80 = vector.broadcast %79 : vector<16x1xf32> to vector<16x32xf32>
    %81 = arith.subf %73, %80 : vector<16x32xf32>
    %82 = arith.mulf %81, %81 : vector<16x32xf32>
    %cst_25 = arith.constant dense<0.000000e+00> : vector<16xf32>
    %83 = vector.multi_reduction <add>, %82, %cst_25 [1] : vector<16x32xf32> to vector<16xf32>
    %84 = vector.shape_cast %83 : vector<16xf32> to vector<16x1xf32>
    %cst_26 = arith.constant 3.200000e+01 : f32
    %85 = vector.broadcast %cst_26 : f32 to vector<16x1xf32>
    %86 = arith.divf %84, %85 : vector<16x1xf32>
    %87 = vector.broadcast %79 : vector<16x1xf32> to vector<16x32xf32>
    %88 = arith.subf %73, %87 : vector<16x32xf32>
    %cst_27 = arith.constant 9.99999974E-6 : f32
    %89 = vector.broadcast %cst_27 : f32 to vector<16x1xf32>
    %90 = arith.addf %86, %89 : vector<16x1xf32>
    %91 = math.rsqrt %90 : vector<16x1xf32>
    %92 = vector.broadcast %91 : vector<16x1xf32> to vector<16x32xf32>
    %93 = arith.mulf %88, %92 : vector<16x32xf32>
    %94 = vector.broadcast %74 : vector<1x32xf32> to vector<16x32xf32>
    %95 = arith.mulf %93, %94 : vector<16x32xf32>
    %96 = vector.broadcast %75 : vector<1x32xf32> to vector<16x32xf32>
    %97 = arith.addf %95, %96 : vector<16x32xf32>
    %c32 = arith.constant 32 : index
    %c0_28 = arith.constant 0 : index
    %98 = vector.load %arg2[%c32, %c0_28] : memref<64x96xf32, #tpu.memory_space<vmem>>, vector<32x96xf32>
    %c32_29 = arith.constant 32 : index
    %c0_30 = arith.constant 0 : index
    %99 = vector.load %arg3[%c32_29, %c0_30] : memref<66x32xf32, #tpu.memory_space<vmem>>, vector<32x32xf32>
    %c65 = arith.constant 65 : index
    %c0_31 = arith.constant 0 : index
    %100 = vector.load %arg3[%c65, %c0_31] : memref<66x32xf32, #tpu.memory_space<vmem>>, vector<1x32xf32>
    %cst_32 = arith.constant dense<0.000000e+00> : vector<16x96xf32>
    %101 = tpu.matmul %97, %98, %cst_32 {dimension_numbers = #tpu.dot_dimension_numbers<[1], [0], [0], [1], [0, 0, 1, 1], [], []>} : vector<16x32xf32>, vector<32x96xf32>, vector<16x96xf32> -> vector<16x96xf32>
    %102 = vector.extract_strided_slice %101 {offsets = [0, 0], sizes = [16, 8], strides = [1, 1]} : vector<16x96xf32> to vector<16x8xf32>
    %103 = vector.extract_strided_slice %101 {offsets = [0, 8], sizes = [16, 8], strides = [1, 1]} : vector<16x96xf32> to vector<16x8xf32>
    %104 = vector.extract_strided_slice %101 {offsets = [0, 16], sizes = [16, 8], strides = [1, 1]} : vector<16x96xf32> to vector<16x8xf32>
    %105 = vector.extract_strided_slice %101 {offsets = [0, 24], sizes = [16, 8], strides = [1, 1]} : vector<16x96xf32> to vector<16x8xf32>
    %106 = tpu.concatenate %102, %103, %104, %105 in 0 : vector<16x8xf32>, vector<16x8xf32>, vector<16x8xf32>, vector<16x8xf32> -> vector<64x8xf32>
    %107 = vector.extract_strided_slice %101 {offsets = [0, 32], sizes = [16, 8], strides = [1, 1]} : vector<16x96xf32> to vector<16x8xf32>
    %108 = vector.extract_strided_slice %101 {offsets = [0, 40], sizes = [16, 8], strides = [1, 1]} : vector<16x96xf32> to vector<16x8xf32>
    %109 = vector.extract_strided_slice %101 {offsets = [0, 48], sizes = [16, 8], strides = [1, 1]} : vector<16x96xf32> to vector<16x8xf32>
    %110 = vector.extract_strided_slice %101 {offsets = [0, 56], sizes = [16, 8], strides = [1, 1]} : vector<16x96xf32> to vector<16x8xf32>
    %111 = tpu.concatenate %107, %108, %109, %110 in 0 : vector<16x8xf32>, vector<16x8xf32>, vector<16x8xf32>, vector<16x8xf32> -> vector<64x8xf32>
    %112 = vector.extract_strided_slice %101 {offsets = [0, 64], sizes = [16, 8], strides = [1, 1]} : vector<16x96xf32> to vector<16x8xf32>
    %113 = vector.extract_strided_slice %101 {offsets = [0, 72], sizes = [16, 8], strides = [1, 1]} : vector<16x96xf32> to vector<16x8xf32>
    %114 = vector.extract_strided_slice %101 {offsets = [0, 80], sizes = [16, 8], strides = [1, 1]} : vector<16x96xf32> to vector<16x8xf32>
    %115 = vector.extract_strided_slice %101 {offsets = [0, 88], sizes = [16, 8], strides = [1, 1]} : vector<16x96xf32> to vector<16x8xf32>
    %116 = tpu.concatenate %112, %113, %114, %115 in 0 : vector<16x8xf32>, vector<16x8xf32>, vector<16x8xf32>, vector<16x8xf32> -> vector<64x8xf32>
    %cst_33 = arith.constant dense<0.000000e+00> : vector<64x64xf32>
    %117 = tpu.matmul %106, %111, %cst_33 {dimension_numbers = #tpu.dot_dimension_numbers<[1], [1], [0], [0], [0, 0, 1, 0], [], []>} : vector<64x8xf32>, vector<64x8xf32>, vector<64x64xf32> -> vector<64x64xf32>
    %cst_34 = arith.constant -1.000000e+30 : f32
    %118 = vector.broadcast %cst_34 : f32 to vector<64x64xf32>
    %119 = arith.select %7, %117, %118 : vector<64x64xi1>, vector<64x64xf32>
    %cst_35 = arith.constant dense<0xFF800000> : vector<64xf32>
    %120 = vector.multi_reduction <maximumf>, %119, %cst_35 [1] : vector<64x64xf32> to vector<64xf32>
    %121 = vector.shape_cast %120 : vector<64xf32> to vector<64x1xf32>
    %122 = vector.broadcast %121 : vector<64x1xf32> to vector<64x64xf32>
    %123 = arith.subf %119, %122 : vector<64x64xf32>
    %124 = math.exp %123 : vector<64x64xf32>
    %cst_36 = arith.constant dense<0.000000e+00> : vector<64xf32>
    %125 = vector.multi_reduction <add>, %124, %cst_36 [1] : vector<64x64xf32> to vector<64xf32>
    %126 = vector.shape_cast %125 : vector<64xf32> to vector<64x1xf32>
    %127 = tpu.reciprocal %126 {approx = true} : vector<64x1xf32> -> vector<64x1xf32>
    %128 = vector.broadcast %127 : vector<64x1xf32> to vector<64x64xf32>
    %129 = arith.mulf %124, %128 : vector<64x64xf32>
    %cst_37 = arith.constant dense<0.000000e+00> : vector<64x8xf32>
    %130 = tpu.matmul %129, %116, %cst_37 {dimension_numbers = #tpu.dot_dimension_numbers<[1], [0], [0], [1], [0, 0, 1, 1], [], []>} : vector<64x64xf32>, vector<64x8xf32>, vector<64x8xf32> -> vector<64x8xf32>
    %131 = vector.extract_strided_slice %130 {offsets = [0, 0], sizes = [16, 8], strides = [1, 1]} : vector<64x8xf32> to vector<16x8xf32>
    %132 = vector.extract_strided_slice %130 {offsets = [16, 0], sizes = [16, 8], strides = [1, 1]} : vector<64x8xf32> to vector<16x8xf32>
    %133 = vector.extract_strided_slice %130 {offsets = [32, 0], sizes = [16, 8], strides = [1, 1]} : vector<64x8xf32> to vector<16x8xf32>
    %134 = vector.extract_strided_slice %130 {offsets = [48, 0], sizes = [16, 8], strides = [1, 1]} : vector<64x8xf32> to vector<16x8xf32>
    %135 = tpu.concatenate %131, %132, %133, %134 in 1 : vector<16x8xf32>, vector<16x8xf32>, vector<16x8xf32>, vector<16x8xf32> -> vector<16x32xf32>
    %cst_38 = arith.constant dense<0.000000e+00> : vector<16x32xf32>
    %136 = tpu.matmul %135, %99, %cst_38 {dimension_numbers = #tpu.dot_dimension_numbers<[1], [0], [0], [1], [0, 0, 1, 1], [], []>} : vector<16x32xf32>, vector<32x32xf32>, vector<16x32xf32> -> vector<16x32xf32>
    %137 = vector.broadcast %100 : vector<1x32xf32> to vector<16x32xf32>
    %138 = arith.addf %136, %137 : vector<16x32xf32>
    %139 = arith.addf %138, %73 : vector<16x32xf32>
    %c4 = arith.constant 4 : index
    %c0_39 = arith.constant 0 : index
    %140 = vector.load %arg6[%c4, %c0_39] : memref<6x32xf32, #tpu.memory_space<vmem>>, vector<1x32xf32>
    %c5 = arith.constant 5 : index
    %c0_40 = arith.constant 0 : index
    %141 = vector.load %arg6[%c5, %c0_40] : memref<6x32xf32, #tpu.memory_space<vmem>>, vector<1x32xf32>
    %cst_41 = arith.constant dense<0.000000e+00> : vector<16xf32>
    %142 = vector.multi_reduction <add>, %139, %cst_41 [1] : vector<16x32xf32> to vector<16xf32>
    %143 = vector.shape_cast %142 : vector<16xf32> to vector<16x1xf32>
    %cst_42 = arith.constant 3.200000e+01 : f32
    %144 = vector.broadcast %cst_42 : f32 to vector<16x1xf32>
    %145 = arith.divf %143, %144 : vector<16x1xf32>
    %146 = vector.broadcast %145 : vector<16x1xf32> to vector<16x32xf32>
    %147 = arith.subf %139, %146 : vector<16x32xf32>
    %148 = arith.mulf %147, %147 : vector<16x32xf32>
    %cst_43 = arith.constant dense<0.000000e+00> : vector<16xf32>
    %149 = vector.multi_reduction <add>, %148, %cst_43 [1] : vector<16x32xf32> to vector<16xf32>
    %150 = vector.shape_cast %149 : vector<16xf32> to vector<16x1xf32>
    %cst_44 = arith.constant 3.200000e+01 : f32
    %151 = vector.broadcast %cst_44 : f32 to vector<16x1xf32>
    %152 = arith.divf %150, %151 : vector<16x1xf32>
    %153 = vector.broadcast %145 : vector<16x1xf32> to vector<16x32xf32>
    %154 = arith.subf %139, %153 : vector<16x32xf32>
    %cst_45 = arith.constant 9.99999974E-6 : f32
    %155 = vector.broadcast %cst_45 : f32 to vector<16x1xf32>
    %156 = arith.addf %152, %155 : vector<16x1xf32>
    %157 = math.rsqrt %156 : vector<16x1xf32>
    %158 = vector.broadcast %157 : vector<16x1xf32> to vector<16x32xf32>
    %159 = arith.mulf %154, %158 : vector<16x32xf32>
    %160 = vector.broadcast %140 : vector<1x32xf32> to vector<16x32xf32>
    %161 = arith.mulf %159, %160 : vector<16x32xf32>
    %162 = vector.broadcast %141 : vector<1x32xf32> to vector<16x32xf32>
    %163 = arith.addf %161, %162 : vector<16x32xf32>
    %c0_46 = arith.constant 0 : index
    %c0_47 = arith.constant 0 : index
    %164 = vector.load %arg4[%c0_46, %c0_47] : memref<33x128xf32, #tpu.memory_space<vmem>>, vector<32x128xf32>
    %cst_48 = arith.constant dense<0.000000e+00> : vector<16x128xf32>
    %165 = tpu.matmul %163, %164, %cst_48 {dimension_numbers = #tpu.dot_dimension_numbers<[1], [0], [0], [1], [0, 0, 1, 1], [], []>} : vector<16x32xf32>, vector<32x128xf32>, vector<16x128xf32> -> vector<16x128xf32>
    %c32_49 = arith.constant 32 : index
    %c0_50 = arith.constant 0 : index
    %166 = vector.load %arg4[%c32_49, %c0_50] : memref<33x128xf32, #tpu.memory_space<vmem>>, vector<1x128xf32>
    %167 = vector.broadcast %166 : vector<1x128xf32> to vector<16x128xf32>
    %168 = arith.addf %165, %167 : vector<16x128xf32>
    %cst_51 = arith.constant 5.000000e-01 : f32
    %169 = vector.broadcast %cst_51 : f32 to vector<16x128xf32>
    %170 = arith.mulf %169, %168 : vector<16x128xf32>
    %cst_52 = arith.constant 0.707106769 : f32
    %171 = vector.broadcast %cst_52 : f32 to vector<16x128xf32>
    %172 = arith.mulf %168, %171 : vector<16x128xf32>
    %173 = math.erf %172 : vector<16x128xf32>
    %cst_53 = arith.constant 1.000000e+00 : f32
    %174 = vector.broadcast %cst_53 : f32 to vector<16x128xf32>
    %175 = arith.addf %174, %173 : vector<16x128xf32>
    %176 = arith.mulf %170, %175 : vector<16x128xf32>
    %c0_54 = arith.constant 0 : index
    %c0_55 = arith.constant 0 : index
    %177 = vector.load %arg5[%c0_54, %c0_55] : memref<129x32xf32, #tpu.memory_space<vmem>>, vector<128x32xf32>
    %cst_56 = arith.constant dense<0.000000e+00> : vector<16x32xf32>
    %178 = tpu.matmul %176, %177, %cst_56 {dimension_numbers = #tpu.dot_dimension_numbers<[1], [0], [0], [1], [0, 0, 1, 1], [], []>} : vector<16x128xf32>, vector<128x32xf32>, vector<16x32xf32> -> vector<16x32xf32>
    %c128 = arith.constant 128 : index
    %c0_57 = arith.constant 0 : index
    %179 = vector.load %arg5[%c128, %c0_57] : memref<129x32xf32, #tpu.memory_space<vmem>>, vector<1x32xf32>
    %180 = vector.broadcast %179 : vector<1x32xf32> to vector<16x32xf32>
    %181 = arith.addf %178, %180 : vector<16x32xf32>
    %182 = arith.addf %181, %139 : vector<16x32xf32>
    %183 = vector.extract_strided_slice %182 {offsets = [0, 0], sizes = [4, 32], strides = [1, 1]} : vector<16x32xf32> to vector<4x32xf32>
    %184 = vector.extract_strided_slice %182 {offsets = [4, 0], sizes = [4, 32], strides = [1, 1]} : vector<16x32xf32> to vector<4x32xf32>
    %185 = vector.extract_strided_slice %182 {offsets = [8, 0], sizes = [4, 32], strides = [1, 1]} : vector<16x32xf32> to vector<4x32xf32>
    %186 = vector.extract_strided_slice %182 {offsets = [12, 0], sizes = [4, 32], strides = [1, 1]} : vector<16x32xf32> to vector<4x32xf32>
    %187 = tpu.concatenate %183, %184, %185, %186 in 1 : vector<4x32xf32>, vector<4x32xf32>, vector<4x32xf32>, vector<4x32xf32> -> vector<4x128xf32>
    %c0_58 = arith.constant 0 : index
    %c0_59 = arith.constant 0 : index
    %188 = vector.load %arg7[%c0_58, %c0_59] : memref<4x128xf32, #tpu.memory_space<vmem>>, vector<4x128xf32>
    tpu.vector_store %arg7[%c0_58, %c0_59], %187 {strides = array<i32>} : memref<4x128xf32, #tpu.memory_space<vmem>>, vector<4x128xf32>,
    return
  }
  func.func @transform_0(%arg0: i32) -> (i32, i32) {
    %c0_i32 = arith.constant 0 : i32
    %c0_i32_0 = arith.constant 0 : i32
    %c0_i32_1 = arith.constant 0 : i32
    return %c0_i32, %c0_i32_0 : i32, i32
  }
  func.func @transform_1(%arg0: i32) -> (i32, i32) {
    %c0_i32 = arith.constant 0 : i32
    %c0_i32_0 = arith.constant 0 : i32
    %c0_i32_1 = arith.constant 0 : i32
    return %c0_i32, %c0_i32_0 : i32, i32
  }
  func.func @transform_2(%arg0: i32) -> (i32, i32) {
    %c0_i32 = arith.constant 0 : i32
    %c0_i32_0 = arith.constant 0 : i32
    %c0_i32_1 = arith.constant 0 : i32
    return %c0_i32, %c0_i32_0 : i32, i32
  }
  func.func @transform_3(%arg0: i32) -> (i32, i32) {
    %c0_i32 = arith.constant 0 : i32
    %c0_i32_0 = arith.constant 0 : i32
    %c0_i32_1 = arith.constant 0 : i32
    return %c0_i32, %c0_i32_0 : i32, i32
  }
  func.func @transform_4(%arg0: i32) -> (i32, i32) {
    %c0_i32 = arith.constant 0 : i32
    %c0_i32_0 = arith.constant 0 : i32
    %c0_i32_1 = arith.constant 0 : i32
    return %c0_i32, %c0_i32_0 : i32, i32
  }
  func.func @transform_5(%arg0: i32) -> (i32, i32) {
    %c0_i32 = arith.constant 0 : i32
    %c0_i32_0 = arith.constant 0 : i32
    %c0_i32_1 = arith.constant 0 : i32
    return %c0_i32, %c0_i32_0 : i32, i32
  }
  func.func @transform_6(%arg0: i32) -> (i32, i32) {
    %c0_i32 = arith.constant 0 : i32
    %c0_i32_0 = arith.constant 0 : i32
    %c0_i32_1 = arith.constant 0 : i32
    return %c0_i32, %c0_i32_0 : i32, i32
  }
}

</mosaic_0001>

<bundles_post_ra>
// kernel: tpu_custom_call.1
= control target key start
LH: loop header
LB: loop body
LE: loop exit
PB: predicated region body
PF: predicated region fallthrough
CT: control target
= control target key end

     0   :  { %vm56_vm0 = vcmask 261120   ;;  %s2750_s0 = inlined_call_operand.vmem [shape: f32[16,32], index: 0, kind: input, shape index: {}]   ;;  %s2751_s1 = inlined_call_operand.vmem [shape: f32[64,96], index: 1, kind: input, shape index: {}]   ;;  %s2752_s2 = inlined_call_operand.vmem [shape: f32[66,32], index: 2, kind: input, shape index: {}]   ;;  %s2753_s3 = inlined_call_operand.vmem [shape: f32[33,128], index: 3, kind: input, shape index: {}]   ;;  %s2754_s4 = inlined_call_operand.vmem [shape: f32[129,32], index: 4, kind: input, shape index: {}]   ;;  %s2755_s5 = inlined_call_operand.vmem [shape: f32[6,32], index: 5, kind: input, shape index: {}]   ;;  %s2756_s6 = inlined_call_operand.hbm [shape: f32[4,128], index: 6, kind: output, shape index: {}]  }
   0x1   :  { %v2198_v0 = vld [vmem:[%s2750_s0] sm:$0xff]  ;;  %v2203_v1 = vld [vmem:[%s2750_s0 + $0x8] sm:$0xff] }
   0x2   :  { %11 = vsyncpa [#allocation3], 0  ;;  %v57_v2 = vsel %vm56_vm0, %v2198_v0, 0.0  ;;  %v60_v3 = vsel %vm56_vm0, %v2203_v1, 0.0  ;;  %v99_v14 = vld [vmem:[%s2751_s1 + $0x18] sm:$0xff]  ;;  %v98_v15 = vld [vmem:[%s2751_s1 + $0x10] sm:$0xff]  ;;  %v26_v50 = vlaneseq }
   0x3   :  { %58 = vadd.xlane.f32.xlu0 %v57_v2  ;;  %1836 = vmatprep.subr.mxu0 %v99_v14  ;;  %v97_v16 = vld [vmem:[%s2751_s1 + $0x8] sm:$0xff]  ;;  %v96_v17 = vld [vmem:[%s2751_s1] sm:$0xff]  ;;  %vm216_vm1 = vcmask 64512   ;;  %s2150_s12 = smov 104   ;;  %s2151_s13 = smov 120   ;;  %vm362_vm3 = vcmask 523264  }
   0x4   :  { %1837 = vmatpush3.msra.mxu0 %v99_v14  ;;  %v1656_v25 = vld [vmem:[%s2755_s5] ss:$0 sm:$0xff]  ;;  %v1657_v27 = vld [vmem:[%s2755_s5 + $0x1] ss:$0 sm:$0xff]  ;;  %s2152_s14 = smov 112   ;;  %s2153_s15 = smov 96  }
   0x5   :  { %1838 = vmatprep.subr.mxu0 %v98_v15  ;;  %v27_v51 = vshrl.u32 %v26_v50, 7  ;;  %v44_v53 = vand.u32 127, %v26_v50  ;;  %s2154_s16 = smov 64   ;;  %s2155_s0 = smov 8   ;;  %vm630_vm11 = vcmask 130048   ;;  %vm633_vm12 = vcmask 195584  }
   0x6   :  { %1839 = vmatpush3.msra.mxu0 %v98_v15  ;;  %s2156_s25 = smov 16   ;;  %s2157_s26 = smov 24   ;;  %vm1639_vm13 = vcmask 785408  }
   0x7   :  { %61 = vadd.xlane.f32.xlu0 %v60_v3  ;;  %1840 = vmatprep.subr.mxu0 %v97_v16  ;;  %v28_v52 = vadd.s32 8, %v27_v51  ;;  %v30_v54 = vadd.s32 24, %v27_v51  ;;  %v45_v56 = vshra.s32 %v44_v53, 3  ;;  %v35_v57 = vshra.s32 %v27_v51, 3  ;;  %s2158_s24 = smov 32  }
   0x8   :  { %1841 = vmatpush3.msra.mxu0 %v97_v16  ;;  %v29_v59 = vadd.s32 16, %v27_v51  ;;  %v32_v61 = vadd.s32 40, %v27_v51 }
   0x9   :  { %1842 = vmatprep.subr.mxu0 %v96_v17  ;;  %v36_v55 = vshra.s32 %v28_v52, 3  ;;  %v38_v58 = vshra.s32 %v30_v54, 3  ;;  %vm2313_vm4 = vcmp.eq.s32.totalorder %v35_v57, %v45_v56 }
   0xa   :  { %1843 = vmatpush3.msra.mxu0 %v96_v17 }
   0xb   :  { %vm2309_vm2 = vcmp.eq.s32.totalorder %v36_v55, %v45_v56  ;;  %vm2319_vm5 = vcmp.eq.s32.totalorder %v38_v58, %v45_v56 }
  0x8c   :  { %v59_v4 = vpop.xlane.xlu0 %58 }
  0x8d   :  { %v64_v5 = vmul.f32 0.03125, %v59_v4  ;;  %v37_v4 = vshra.s32 %v29_v59, 3 }
  0x8f   :  { %v66_v6 = vsub.f32 %v2198_v0, %v64_v5  ;;  %vm2329_vm6 = vcmp.eq.s32.totalorder %v37_v4, %v45_v56 }
  0x90   :  { %v62_v7 = vpop.xlane.xlu0 %61 }
  0x91   :  { %v65_v8 = vmul.f32 0.03125, %v62_v7  ;;  %v68_v9 = vmul.f32 %v66_v6, %v66_v6  ;;  %v40_v7 = vshra.s32 %v32_v61, 3 }
  0x93   :  { %v67_v10 = vsub.f32 %v2203_v1, %v65_v8  ;;  %v70_v11 = vsel %vm56_vm0, %v68_v9, 0.0  ;;  %v31_v8 = vadd.s32 32, %v27_v51  ;;  %v34_v9 = vadd.s32 56, %v27_v51 }
  0x94   :  { %71 = vadd.xlane.f32.xlu1 %v70_v11  ;;  %vm2333_vm7 = vcmp.eq.s32.totalorder %v40_v7, %v45_v56 }
  0x95   :  { %v69_v12 = vmul.f32 %v67_v10, %v67_v10  ;;  %v39_v17 = vshra.s32 %v31_v8, 3 }
  0x97   :  { %v73_v13 = vsel %vm56_vm0, %v69_v12, 0.0  ;;  %vm2342_vm8 = vcmp.eq.s32.totalorder %v39_v17, %v45_v56 }
  0x98   :  { %74 = vadd.xlane.f32.xlu1 %v73_v13 }
 0x11d   :  { %v72_v18 = vpop.xlane.xlu1 %71 }
 0x11e   :  { %v76_v19 = vmul.f32 0.03125, %v72_v18  ;;  %v42_v18 = vshra.s32 %v34_v9, 3 }
 0x120   :  { %v78_v20 = vadd.f32 1e-05, %v76_v19  ;;  %v33_v19 = vadd.s32 48, %v27_v51  ;;  %vm2347_vm9 = vcmp.eq.s32.totalorder %v42_v18, %v45_v56 }
 0x121   :  { %v75_v21 = vpop.xlane.xlu1 %74 }
 0x122   :  { %2048 = vrsqrt.f32 %v78_v20  ;;  %v77_v22 = vmul.f32 0.03125, %v75_v21 }
 0x124   :  { %v79_v23 = vadd.f32 1e-05, %v77_v22 }
 0x126   :  { %2050 = vrsqrt.f32 %v79_v23 }
 0x12f   :  { %v2049_v24 = vpop.eup %2048 }
 0x130   :  { %v82_v26 = vmul.f32 %v2049_v24, %v66_v6 }
 0x132   :  { %v88_v28 = vmul.f32 %v1656_v25, %v82_v26 }
 0x133   :  { %v2051_v29 = vpop.eup %2050 }
 0x134   :  { %v83_v30 = vmul.f32 %v2051_v29, %v67_v10  ;;  %v94_v31 = vadd.f32 %v1657_v27, %v88_v28  ;;  %v41_v28 = vshra.s32 %v33_v19, 3 }
 0x136   :  { %v89_v32 = vmul.f32 %v1656_v25, %v83_v30  ;;  %1844 = vmatprep.mubr.msk.f32.mxu0 %vm56_vm0, %v94_v31  ;;  %vm2356_vm10 = vcmp.eq.s32.totalorder %v41_v28, %v45_v56 }
 0x138   :  { %v95_v33 = vadd.f32 %v1657_v27, %v89_v32 }
 0x13a   :  { %1845 = vmatmul.mubr.msk.f32.vlgmr.msra.gmra.mxu0 %vm56_vm0, %v95_v33 }
 0x1fa   :  { %v2233_v34 = vpop.f32.mrf.mxu0 }
 0x1fb   :  { %198 = vrot.lane.b32.xlu0 %v2233_v34, %s2150_s12 }
 0x1fc   :  { %v2237_v35 = vpop.f32.mrf.mxu0 }
 0x1fd   :  { %196 = vrot.lane.b32.xlu1 %v2237_v35, %s2150_s12  ;;  %1863 = vmatprep.mubr.msk.f32.mxu1 %vm216_vm1, %v2237_v35 }
 0x1ff   :  { %190 = vrot.lane.b32.xlu0 %v2233_v34, %s2151_s13 }
 0x201   :  { %194 = vrot.lane.b32.xlu1 %v2233_v34, %s2152_s14 }
 0x205   :  { %192 = vrot.lane.b32.xlu1 %v2237_v35, %s2152_s14 }
 0x209   :  { %188 = vrot.lane.b32.xlu1 %v2237_v35, %s2151_s13 }
 0x26d   :  { %v2251_v36 = vpop.permute.xlu0 %198 }
 0x26e   :  { %214 = vrot.lane.b32.xlu0 %v2251_v36, %s2153_s15 }
 0x26f   :  { %v2255_v37 = vpop.permute.xlu1 %196 }
 0x270   :  { %212 = vrot.lane.b32.xlu1 %v2255_v37, %s2153_s15 }
 0x271   :  { %v2263_v39 = vpop.permute.xlu0 %190 }
 0x273   :  { %v2259_v38 = vpop.permute.xlu1 %194 }
 0x274   :  { %210 = vrot.lane.b32.xlu0 %v2259_v38, %s2153_s15 }
 0x277   :  { %v2265_v40 = vpop.permute.xlu1 %192 }
 0x278   :  { %206 = vrot.lane.b32.xlu0 %v2263_v39, %s2153_s15  ;;  %208 = vrot.lane.b32.xlu1 %v2265_v40, %s2153_s15 }
 0x27b   :  { %v2271_v41 = vpop.permute.xlu1 %188 }
 0x27c   :  { %202 = vrot.lane.b32.xlu0 %v2233_v34, %s2153_s15  ;;  %204 = vrot.lane.b32.xlu1 %v2271_v41, %s2153_s15 }
 0x280   :  { %200 = vrot.lane.b32.xlu1 %v2237_v35, %s2153_s15 }
 0x2e0   :  { %v215_v42 = vpop.permute.xlu0 %214 }
 0x2e1   :  { %1847 = vmatprep.subr.msk.mxu1 %vm216_vm1, %v215_v42 }
 0x2e2   :  { %1848 = vmatpush3.xpose.msk.msra.mxu1 %vm216_vm1, %v215_v42  ;;  %v213_v43 = vpop.permute.xlu1 %212 }
 0x2e3   :  { %1849 = vmatprep.subr.msk.mxu1 %vm216_vm1, %v213_v43 }
 0x2e6   :  { %v211_v44 = vpop.permute.xlu0 %210  ;;  %1850 = vmatpush3.xpose.msk.msra.mxu1 %vm216_vm1, %v213_v43 }
 0x2e7   :  { %1851 = vmatprep.subr.msk.mxu1 %vm216_vm1, %v211_v44 }
 0x2ea   :  { %1852 = vmatpush3.xpose.msk.msra.mxu1 %vm216_vm1, %v211_v44  ;;  %v209_v45 = vpop.permute.xlu1 %208  ;;  %v207_v46 = vpop.permute.xlu0 %206 }
 0x2eb   :  { %1853 = vmatprep.subr.msk.mxu1 %vm216_vm1, %v209_v45 }
 0x2ee   :  { %1854 = vmatpush3.xpose.msk.msra.mxu1 %vm216_vm1, %v209_v45  ;;  %v205_v47 = vpop.permute.xlu1 %204  ;;  %v203_v48 = vpop.permute.xlu0 %202 }
 0x2ef   :  { %1855 = vmatprep.subr.msk.mxu1 %vm216_vm1, %v207_v46 }
 0x2f2   :  { %1856 = vmatpush3.xpose.msk.msra.mxu1 %vm216_vm1, %v207_v46  ;;  %v201_v49 = vpop.permute.xlu1 %200 }
 0x2f3   :  { %1857 = vmatprep.subr.msk.mxu1 %vm216_vm1, %v205_v47 }
 0x2f6   :  { %1858 = vmatpush3.xpose.msk.msra.mxu1 %vm216_vm1, %v205_v47 }
 0x2f7   :  { %1859 = vmatprep.subr.msk.mxu1 %vm216_vm1, %v203_v48 }
 0x2fa   :  { %1860 = vmatpush3.xpose.msk.msra.mxu1 %vm216_vm1, %v203_v48 }
 0x2fb   :  { %1861 = vmatprep.subr.msk.mxu1 %vm216_vm1, %v201_v49 }
 0x2fe   :  { %1862 = vmatpush3.xpose.msk.msra.mxu1 %vm216_vm1, %v201_v49 }
 0x301   :  { %1864 = vmatmul.mubr.msk.f32.vlgmr.msra.gmra.mxu1 %vm216_vm1, %v2233_v34 }
 0x302   :  { %1866 = vmatprep.mubr.msk.f32.mxu1 %vm216_vm1, %v2271_v41 }
 0x305   :  { %1867 = vmatmul.mubr.msk.f32.gmra.mxu1 %vm216_vm1, %v2263_v39 }
 0x306   :  { %1869 = vmatprep.mubr.msk.f32.mxu1 %vm216_vm1, %v2265_v40 }
 0x309   :  { %1870 = vmatmul.mubr.msk.f32.gmra.mxu1 %vm216_vm1, %v2259_v38 }
 0x30a   :  { %1872 = vmatprep.mubr.msk.f32.mxu1 %vm216_vm1, %v2255_v37 }
 0x30d   :  { %1873 = vmatmul.mubr.msk.f32.gmra.mxu1 %vm216_vm1, %v2251_v36 }
 0x3c1   :  { %v1865_v62 = vpop.f32.mrf.mxu1 }
 0x3c2   :  { %v355_v2 = vsel %vm2309_vm2, %v1865_v62, -1e+30 }
 0x3c3   :  { %v315_v5 = vpop.f32.mrf.mxu1  ;;  %v366_v6 = vsel %vm362_vm3, %v355_v2, -inf }
 0x3c4   :  { %v354_v10 = vsel %vm2313_vm4, %v315_v5, -1e+30  ;;  %367 = vmax.xlane.f32.xlu1 %v366_v6 }
 0x3c5   :  { %v1868_v11 = vpop.f32.mrf.mxu1  ;;  %v363_v12 = vsel %vm362_vm3, %v354_v10, -inf }
 0x3c6   :  { %v357_v13 = vsel %vm2319_vm5, %v1868_v11, -1e+30  ;;  %364 = vmax.xlane.f32.xlu0 %v363_v12 }
 0x3c7   :  { %v325_v15 = vpop.f32.mrf.mxu1  ;;  %v372_v21 = vsel %vm362_vm3, %v357_v13, -inf }
 0x3c8   :  { %v356_v22 = vsel %vm2329_vm6, %v325_v15, -1e+30 }
 0x3c9   :  { %v1871_v20 = vpop.f32.mrf.mxu1  ;;  %v369_v30 = vsel %vm362_vm3, %v356_v22, -inf }
 0x3ca   :  { %v359_v23 = vsel %vm2333_vm7, %v1871_v20, -1e+30  ;;  %373 = vmax.xlane.f32.xlu0 %v372_v21 }
 0x3cb   :  { %v335_v25 = vpop.f32.mrf.mxu1  ;;  %v378_v26 = vsel %vm362_vm3, %v359_v23, -inf }
 0x3cc   :  { %379 = vmax.xlane.f32.xlu1 %v378_v26  ;;  %v358_v31 = vsel %vm2342_vm8, %v335_v25, -1e+30 }
 0x3cd   :  { %v1874_v29 = vpop.f32.mrf.mxu1  ;;  %v375_v44 = vsel %vm362_vm3, %v358_v31, -inf }
 0x3ce   :  { %v361_v32 = vsel %vm2347_vm9, %v1874_v29, -1e+30  ;;  %370 = vmax.xlane.f32.xlu0 %v369_v30 }
 0x3cf   :  { %v345_v42 = vpop.f32.mrf.mxu1  ;;  %v384_v43 = vsel %vm362_vm3, %v361_v32, -inf }
 0x3d0   :  { %385 = vmax.xlane.f32.xlu1 %v384_v43  ;;  %v360_v45 = vsel %vm2356_vm10, %v345_v42, -1e+30 }
 0x3d1   :  { %v381_v46 = vsel %vm362_vm3, %v360_v45, -inf }
 0x3d2   :  { %376 = vmax.xlane.f32.xlu0 %v375_v44 }
 0x3d6   :  { %382 = vmax.xlane.f32.xlu0 %v381_v46 }
 0x3e1   :  { %463 = vrot.lane.b32.xlu1 %v2255_v37, %s2154_s16 }
 0x3e5   :  { %461 = vrot.lane.b32.xlu1 %v2259_v38, %s2154_s16 }
 0x3e9   :  { %459 = vrot.lane.b32.xlu1 %v2265_v40, %s2154_s16 }
 0x3ec   :  { %465 = vrot.lane.b32.xlu0 %v2251_v36, %s2154_s16 }
 0x3ed   :  { %455 = vrot.lane.b32.xlu1 %v2271_v41, %s2154_s16 }
 0x3f0   :  { %457 = vrot.lane.b32.xlu0 %v2263_v39, %s2154_s16 }
 0x44d   :  { %v368_v47 = vpop.xlane.xlu1 %367 }
 0x44e   :  { %v388_v48 = vsub.f32 %v355_v2, %v368_v47 }
 0x44f   :  { %v365_v49 = vpop.xlane.xlu0 %364 }
 0x450   :  { %v397_v50 = vmul.f32 1.442695, %v388_v48  ;;  %v387_v37 = vsub.f32 %v354_v10, %v365_v49 }
 0x452   :  { %2052 = vpow2.f32 %v397_v50  ;;  %v395_v51 = vmul.f32 1.442695, %v387_v37 }
 0x453   :  { %v374_v38 = vpop.xlane.xlu0 %373 }
 0x454   :  { %2054 = vpow2.f32 %v395_v51  ;;  %v390_v52 = vsub.f32 %v357_v13, %v374_v38 }
 0x455   :  { %v380_v40 = vpop.xlane.xlu1 %379 }
 0x456   :  { %v401_v53 = vmul.f32 1.442695, %v390_v52  ;;  %v392_v54 = vsub.f32 %v359_v23, %v380_v40 }
 0x457   :  { %v371_v36 = vpop.xlane.xlu0 %370 }
 0x458   :  { %2056 = vpow2.f32 %v401_v53  ;;  %v405_v55 = vmul.f32 1.442695, %v392_v54  ;;  %v389_v41 = vsub.f32 %v356_v22, %v371_v36 }
 0x459   :  { %v386_v56 = vpop.xlane.xlu1 %385 }
 0x45a   :  { %2058 = vpow2.f32 %v405_v55  ;;  %v399_v39 = vmul.f32 1.442695, %v389_v41  ;;  %v394_v57 = vsub.f32 %v361_v32, %v386_v56 }
 0x45b   :  { %v377_v58 = vpop.xlane.xlu0 %376 }
 0x45c   :  { %2060 = vpow2.f32 %v399_v39  ;;  %v409_v59 = vmul.f32 1.442695, %v394_v57  ;;  %v391_v61 = vsub.f32 %v358_v31, %v377_v58 }
 0x45d   :  { %v464_v62 = vpop.permute.xlu1 %463 }
 0x45e   :  { %2062 = vpow2.f32 %v409_v59  ;;  %v403_v2 = vmul.f32 1.442695, %v391_v61  ;;  %v103_v59 = vld [vmem:[%s2752_s2 + $0x18] sm:$0xff]  ;;  %v102_v61 = vld [vmem:[%s2752_s2 + $0x10] sm:$0xff] }
 0x45f   :  { %v2377_v4 = vpop.eup %2052  ;;  %v383_v5 = vpop.xlane.xlu0 %382  ;;  %1903 = vmatprep.subr.mxu0 %v103_v59 }
 0x460   :  { %2064 = vpow2.f32 %v403_v2  ;;  %v393_v6 = vsub.f32 %v360_v45, %v383_v5  ;;  %v414_v7 = vsel %vm362_vm3, %v2377_v4, 0.0  ;;  %1904 = vmatpush3.msra.mxu0 %v103_v59  ;;  %v1688_v59 = vld [vmem:[%s2755_s5 + $0x3] ss:$0 sm:$0xff] }
 0x461   :  { %v2055_v8 = vpop.eup %2054  ;;  %415 = vadd.xlane.f32.xlu1 %v414_v7  ;;  %v462_v10 = vpop.permute.xlu1 %461  ;;  %1905 = vmatprep.subr.mxu0 %v102_v61 }
 0x462   :  { %v407_v9 = vmul.f32 1.442695, %v393_v6  ;;  %v411_v11 = vsel %vm362_vm3, %v2055_v8, 0.0  ;;  %1906 = vmatpush3.msra.mxu0 %v102_v61 }
 0x463   :  { %412 = vadd.xlane.f32.xlu0 %v411_v11  ;;  %v466_v12 = vpop.permute.xlu0 %465 }
 0x464   :  { %2066 = vpow2.f32 %v407_v9  ;;  %1875 = vmatprep.subr.mxu1 %v466_v12 }
 0x465   :  { %v2382_v13 = vpop.eup %2056  ;;  %1876 = vmatpush3.msra.mxu1 %v466_v12  ;;  %v460_v18 = vpop.permute.xlu1 %459 }
 0x466   :  { %1877 = vmatprep.subr.mxu1 %v464_v62  ;;  %v420_v15 = vsel %vm362_vm3, %v2382_v13, 0.0 }
 0x467   :  { %v2386_v17 = vpop.eup %2058  ;;  %421 = vadd.xlane.f32.xlu1 %v420_v15  ;;  %1878 = vmatpush3.msra.mxu1 %v464_v62  ;;  %v458_v23 = vpop.permute.xlu0 %457  ;;  %v101_v62 = vld [vmem:[%s2752_s2 + $0x8] sm:$0xff] }
 0x468   :  { %1879 = vmatprep.subr.mxu1 %v462_v10  ;;  %v426_v20 = vsel %vm362_vm3, %v2386_v17, 0.0  ;;  %1907 = vmatprep.subr.mxu0 %v101_v62 }
 0x469   :  { %v2061_v19 = vpop.eup %2060  ;;  %1880 = vmatpush3.msra.mxu1 %v462_v10  ;;  %v456_v26 = vpop.permute.xlu1 %455  ;;  %1908 = vmatpush3.msra.mxu0 %v101_v62 }
 0x46a   :  { %1881 = vmatprep.subr.mxu1 %v460_v18  ;;  %v417_v21 = vsel %vm362_vm3, %v2061_v19, 0.0 }
 0x46b   :  { %v2391_v22 = vpop.eup %2062  ;;  %427 = vadd.xlane.f32.xlu1 %v426_v20  ;;  %418 = vadd.xlane.f32.xlu0 %v417_v21 }
 0x46c   :  { %1882 = vmatpush3.msra.mxu1 %v460_v18  ;;  %v432_v28 = vsel %vm362_vm3, %v2391_v22, 0.0 }
 0x46d   :  { %v2065_v25 = vpop.eup %2064  ;;  %1883 = vmatprep.subr.mxu1 %v458_v23 }
 0x46e   :  { %1884 = vmatpush3.msra.mxu1 %v458_v23  ;;  %v423_v29 = vsel %vm362_vm3, %v2065_v25, 0.0 }
 0x46f   :  { %1885 = vmatprep.subr.mxu1 %v456_v26  ;;  %433 = vadd.xlane.f32.xlu1 %v432_v28  ;;  %v1684_v28 = vld [vmem:[%s2752_s2 + $0x40] ss:$0 sm:$0xff] }
 0x470   :  { %424 = vadd.xlane.f32.xlu0 %v423_v29  ;;  %1886 = vmatpush3.msra.mxu1 %v456_v26 }
 0x471   :  { %v2067_v30 = vpop.eup %2066 }
 0x472   :  { %v429_v31 = vsel %vm362_vm3, %v2067_v30, 0.0 }
 0x474   :  { %430 = vadd.xlane.f32.xlu0 %v429_v31 }
 0x480   :  { %451 = vrot.lane.b32.xlu1 %v2237_v35, %s2154_s16 }
 0x48a   :  { %453 = vrot.lane.b32.xlu0 %v2233_v34, %s2154_s16 }
 0x4ea   :  { %v416_v42 = vpop.xlane.xlu1 %415 }
 0x4ec   :  { %v413_v32 = vpop.xlane.xlu0 %412 }
 0x4ed   :  { %2068 = vrcp.f32 %v413_v32 }
 0x4ee   :  { %2070 = vrcp.f32 %v416_v42 }
 0x4f0   :  { %v422_v43 = vpop.xlane.xlu1 %421 }
 0x4f4   :  { %v419_v44 = vpop.xlane.xlu0 %418  ;;  %v428_v45 = vpop.xlane.xlu1 %427 }
 0x4f5   :  { %2072 = vrcp.f32 %v419_v44 }
 0x4f6   :  { %2074 = vrcp.f32 %v422_v43 }
 0x4f8   :  { %v434_v49 = vpop.xlane.xlu1 %433 }
 0x4f9   :  { %v425_v46 = vpop.xlane.xlu0 %424 }
 0x4fa   :  { %v2069_v47 = vpop.eup %2068  ;;  %2076 = vrcp.f32 %v425_v46 }
 0x4fb   :  { %v443_v48 = vmul.f32 %v2069_v47, %v2055_v8  ;;  %2078 = vrcp.f32 %v428_v45  ;;  %v2071_v34 = vpop.eup %2070 }
 0x4fc   :  { %v452_v51 = vpop.permute.xlu1 %451  ;;  %v444_v38 = vmul.f32 %v2071_v34, %v2377_v4  ;;  %v100_v4 = vld [vmem:[%s2752_s2] sm:$0xff] }
 0x4fd   :  { %v431_v50 = vpop.xlane.xlu0 %430  ;;  %1891 = vmatprep.mubr.msk.f32.mxu1 %vm362_vm3, %v443_v48  ;;  %1909 = vmatprep.subr.mxu0 %v100_v4 }
 0x4fe   :  { %2080 = vrcp.f32 %v431_v50  ;;  %1910 = vmatpush3.msra.mxu0 %v100_v4 }
 0x4ff   :  { %2082 = vrcp.f32 %v434_v49 }
 0x501   :  { %v454_v35 = vpop.permute.xlu0 %453 }
 0x502   :  { %1887 = vmatprep.subr.mxu1 %v454_v35  ;;  %v2073_v37 = vpop.eup %2072 }
 0x503   :  { %1888 = vmatpush3.msra.mxu1 %v454_v35  ;;  %v445_v52 = vmul.f32 %v2073_v37, %v2061_v19  ;;  %v2075_v40 = vpop.eup %2074 }
 0x504   :  { %1889 = vmatprep.subr.mxu1 %v452_v51  ;;  %v446_v54 = vmul.f32 %v2075_v40, %v2382_v13  ;;  %v763_v40 = vld [vmem:[%s2751_s1 + $0x20] sm:$0xff] }
 0x505   :  { %1890 = vmatpush3.msra.mxu1 %v452_v51  ;;  %v766_v51 = vld [vmem:[%s2751_s1 + $0x38] sm:$0xff] }
 0x506   :  { %1892 = vmatmul.mubr.msk.f32.vlgmr.msra.gmra.mxu1 %vm362_vm3, %v444_v38  ;;  %v765_v38 = vld [vmem:[%s2751_s1 + $0x30] sm:$0xff]  ;;  %1914 = vmatprep.subr.mxu0 %v766_v51 }
 0x507   :  { %v2077_v53 = vpop.eup %2076  ;;  %1894 = vmatprep.mubr.msk.f32.mxu1 %vm362_vm3, %v445_v52  ;;  %v764_v52 = vld [vmem:[%s2751_s1 + $0x28] sm:$0xff] }
 0x508   :  { %v447_v36 = vmul.f32 %v2077_v53, %v2065_v25  ;;  %v2079_v55 = vpop.eup %2078 }
 0x509   :  { %v448_v56 = vmul.f32 %v2079_v55, %v2386_v17 }
 0x50a   :  { %1895 = vmatmul.mubr.msk.f32.gmra.mxu1 %vm362_vm3, %v446_v54 }
 0x50b   :  { %v2081_v41 = vpop.eup %2080  ;;  %1897 = vmatprep.mubr.msk.f32.mxu1 %vm362_vm3, %v447_v36 }
 0x50c   :  { %v449_v39 = vmul.f32 %v2081_v41, %v2067_v30  ;;  %v2083_v57 = vpop.eup %2082 }
 0x50d   :  { %v450_v58 = vmul.f32 %v2083_v57, %v2391_v22  ;;  %v1687_v57 = vld [vmem:[%s2755_s5 + $0x2] ss:$0 sm:$0xff] }
 0x50e   :  { %1898 = vmatmul.mubr.msk.f32.gmra.mxu1 %vm362_vm3, %v448_v56 }
 0x50f   :  { %1900 = vmatprep.mubr.msk.f32.mxu1 %vm362_vm3, %v449_v39 }
 0x512   :  { %1901 = vmatmul.mubr.msk.f32.gmra.mxu1 %vm362_vm3, %v450_v58 }
 0x5c6   :  { %v1893_v2 = vpop.f32.mrf.mxu1 }
 0x5c8   :  { %v565_v5 = vpop.f32.mrf.mxu1 }
 0x5ca   :  { %v1896_v6 = vpop.f32.mrf.mxu1 }
 0x5cb   :  { %608 = vrot.lane.b32.xlu1 %v1896_v6, %s2155_s0 }
 0x5cc   :  { %v575_v7 = vpop.f32.mrf.mxu1 }
 0x5cd   :  { %606 = vrot.lane.b32.xlu0 %v575_v7, %s2155_s0 }
 0x5ce   :  { %v1899_v8 = vpop.f32.mrf.mxu1 }
 0x5cf   :  { %616 = vrot.lane.b32.xlu1 %v1899_v8, %s2156_s25 }
 0x5d0   :  { %v585_v9 = vpop.f32.mrf.mxu1 }
 0x5d1   :  { %614 = vrot.lane.b32.xlu0 %v585_v9, %s2156_s25 }
 0x5d2   :  { %v1902_v10 = vpop.f32.mrf.mxu1 }
 0x5d3   :  { %624 = vrot.lane.b32.xlu1 %v1902_v10, %s2157_s26 }
 0x5d4   :  { %v595_v11 = vpop.f32.mrf.mxu1 }
 0x5d5   :  { %622 = vrot.lane.b32.xlu0 %v595_v11, %s2157_s26 }
 0x63d   :  { %v609_v12 = vpop.permute.xlu1 %608 }
 0x63e   :  { %v629_v20 = vsel %vm216_vm1, %v1893_v2, %v609_v12 }
 0x63f   :  { %v607_v13 = vpop.permute.xlu0 %606 }
 0x640   :  { %v628_v18 = vsel %vm216_vm1, %v565_v5, %v607_v13 }
 0x641   :  { %v617_v15 = vpop.permute.xlu1 %616 }
 0x642   :  { %v632_v23 = vsel %vm630_vm11, %v629_v20, %v617_v15 }
 0x643   :  { %v615_v17 = vpop.permute.xlu0 %614 }
 0x644   :  { %v631_v21 = vsel %vm630_vm11, %v628_v18, %v615_v17 }
 0x645   :  { %v625_v19 = vpop.permute.xlu1 %624 }
 0x646   :  { %v635_v26 = vsel %vm633_vm12, %v632_v23, %v625_v19 }
 0x647   :  { %v623_v22 = vpop.permute.xlu0 %622 }
 0x648   :  { %v634_v25 = vsel %vm633_vm12, %v631_v21, %v623_v22 }
 0x649   :  { %1911 = vmatprep.mubr.msk.f32.mxu0 %vm56_vm0, %v634_v25 }
 0x64a   :  { %1912 = vmatmul.mubr.msk.f32.vlgmr.msra.gmra.mxu0 %vm56_vm0, %v635_v26 }
 0x64b   :  { %1915 = vmatpush3.msra.mxu0 %v766_v51 }
 0x64c   :  { %1916 = vmatprep.subr.mxu0 %v765_v38 }
 0x64d   :  { %1917 = vmatpush3.msra.mxu0 %v765_v38 }
 0x64e   :  { %1918 = vmatprep.subr.mxu0 %v764_v52 }
 0x64f   :  { %1919 = vmatpush3.msra.mxu0 %v764_v52 }
 0x650   :  { %1920 = vmatprep.subr.mxu0 %v763_v40 }
 0x651   :  { %1921 = vmatpush3.msra.mxu0 %v763_v40 }
 0x70a   :  { %v1913_v29 = vpop.f32.mrf.mxu0 }
 0x70b   :  { %v718_v30 = vadd.f32 %v1913_v29, %v1684_v28 }
 0x70c   :  { %v712_v31 = vpop.f32.mrf.mxu0 }
 0x70d   :  { %v2443_v32 = vadd.f32 %v718_v30, %v2203_v1  ;;  %v713_v42 = vadd.f32 %v1684_v28, %v712_v31 }
 0x70f   :  { %v2446_v43 = vadd.f32 %v713_v42, %v2198_v0  ;;  %v728_v44 = vsel %vm56_vm0, %v2443_v32, 0.0 }
 0x710   :  { %729 = vadd.xlane.f32.xlu1 %v728_v44 }
 0x711   :  { %v725_v45 = vsel %vm56_vm0, %v2446_v43, 0.0 }
 0x712   :  { %726 = vadd.xlane.f32.xlu0 %v725_v45 }
 0x799   :  { %v730_v46 = vpop.xlane.xlu1 %729 }
 0x79a   :  { %v732_v47 = vmul.f32 0.03125, %v730_v46 }
 0x79b   :  { %v727_v48 = vpop.xlane.xlu0 %726 }
 0x79c   :  { %v731_v49 = vmul.f32 0.03125, %v727_v48  ;;  %v734_v50 = vsub.f32 %v2443_v32, %v732_v47 }
 0x79e   :  { %v733_v1 = vsub.f32 %v2446_v43, %v731_v49  ;;  %v736_v35 = vmul.f32 %v734_v50, %v734_v50 }
 0x7a0   :  { %v735_v34 = vmul.f32 %v733_v1, %v733_v1  ;;  %v740_v37 = vsel %vm56_vm0, %v736_v35, 0.0 }
 0x7a2   :  { %v737_v0 = vsel %vm56_vm0, %v735_v34, 0.0 }
 0x7a3   :  { %738 = vadd.xlane.f32.xlu0 %v737_v0 }
 0x7a7   :  { %741 = vadd.xlane.f32.xlu0 %v740_v37 }
 0x82c   :  { %v739_v53 = vpop.xlane.xlu0 %738 }
 0x82d   :  { %v743_v54 = vmul.f32 0.03125, %v739_v53 }
 0x82f   :  { %v745_v36 = vadd.f32 1e-05, %v743_v54 }
 0x830   :  { %v742_v55 = vpop.xlane.xlu0 %741 }
 0x831   :  { %2084 = vrsqrt.f32 %v745_v36  ;;  %v744_v41 = vmul.f32 0.03125, %v742_v55 }
 0x833   :  { %v746_v56 = vadd.f32 1e-05, %v744_v41 }
 0x835   :  { %2086 = vrsqrt.f32 %v746_v56 }
 0x83e   :  { %v2085_v39 = vpop.eup %2084 }
 0x83f   :  { %v749_v58 = vmul.f32 %v2085_v39, %v733_v1 }
 0x841   :  { %v755_v61 = vmul.f32 %v1687_v57, %v749_v58 }
 0x842   :  { %v2087_v62 = vpop.eup %2086 }
 0x843   :  { %v750_v2 = vmul.f32 %v2087_v62, %v734_v50  ;;  %v761_v4 = vadd.f32 %v1688_v59, %v755_v61 }
 0x845   :  { %v756_v5 = vmul.f32 %v1687_v57, %v750_v2  ;;  %1922 = vmatprep.mubr.msk.f32.mxu0 %vm56_vm0, %v761_v4 }
 0x847   :  { %v762_v6 = vadd.f32 %v1688_v59, %v756_v5 }
 0x849   :  { %1923 = vmatmul.mubr.msk.f32.vlgmr.msra.gmra.mxu0 %vm56_vm0, %v762_v6 }
 0x909   :  { %v2476_v7 = vpop.f32.mrf.mxu0 }
 0x90a   :  { %865 = vrot.lane.b32.xlu0 %v2476_v7, %s2150_s12 }
 0x90b   :  { %v2480_v8 = vpop.f32.mrf.mxu0 }
 0x90c   :  { %863 = vrot.lane.b32.xlu1 %v2480_v8, %s2150_s12  ;;  %1941 = vmatprep.mubr.msk.f32.mxu1 %vm216_vm1, %v2480_v8 }
 0x90e   :  { %857 = vrot.lane.b32.xlu0 %v2476_v7, %s2151_s13 }
 0x910   :  { %861 = vrot.lane.b32.xlu1 %v2476_v7, %s2152_s14 }
 0x914   :  { %859 = vrot.lane.b32.xlu1 %v2480_v8, %s2152_s14 }
 0x918   :  { %855 = vrot.lane.b32.xlu1 %v2480_v8, %s2151_s13 }
 0x97c   :  { %v2494_v9 = vpop.permute.xlu0 %865 }
 0x97d   :  { %881 = vrot.lane.b32.xlu0 %v2494_v9, %s2153_s15 }
 0x97e   :  { %v2498_v10 = vpop.permute.xlu1 %863 }
 0x97f   :  { %879 = vrot.lane.b32.xlu1 %v2498_v10, %s2153_s15 }
 0x980   :  { %v2506_v12 = vpop.permute.xlu0 %857 }
 0x982   :  { %v2502_v11 = vpop.permute.xlu1 %861 }
 0x983   :  { %877 = vrot.lane.b32.xlu0 %v2502_v11, %s2153_s15 }
 0x986   :  { %v2508_v13 = vpop.permute.xlu1 %859 }
 0x987   :  { %873 = vrot.lane.b32.xlu0 %v2506_v12, %s2153_s15  ;;  %875 = vrot.lane.b32.xlu1 %v2508_v13, %s2153_s15 }
 0x98a   :  { %v2514_v15 = vpop.permute.xlu1 %855 }
 0x98b   :  { %869 = vrot.lane.b32.xlu0 %v2476_v7, %s2153_s15  ;;  %871 = vrot.lane.b32.xlu1 %v2514_v15, %s2153_s15 }
 0x98f   :  { %867 = vrot.lane.b32.xlu1 %v2480_v8, %s2153_s15 }
 0x9ef   :  { %v882_v17 = vpop.permute.xlu0 %881 }
 0x9f0   :  { %1925 = vmatprep.subr.msk.mxu1 %vm216_vm1, %v882_v17 }
 0x9f1   :  { %1926 = vmatpush3.xpose.msk.msra.mxu1 %vm216_vm1, %v882_v17  ;;  %v880_v18 = vpop.permute.xlu1 %879 }
 0x9f2   :  { %1927 = vmatprep.subr.msk.mxu1 %vm216_vm1, %v880_v18 }
 0x9f5   :  { %v878_v19 = vpop.permute.xlu0 %877  ;;  %1928 = vmatpush3.xpose.msk.msra.mxu1 %vm216_vm1, %v880_v18 }
 0x9f6   :  { %1929 = vmatprep.subr.msk.mxu1 %vm216_vm1, %v878_v19 }
 0x9f9   :  { %1930 = vmatpush3.xpose.msk.msra.mxu1 %vm216_vm1, %v878_v19  ;;  %v876_v20 = vpop.permute.xlu1 %875  ;;  %v874_v21 = vpop.permute.xlu0 %873 }
 0x9fa   :  { %1931 = vmatprep.subr.msk.mxu1 %vm216_vm1, %v876_v20 }
 0x9fd   :  { %1932 = vmatpush3.xpose.msk.msra.mxu1 %vm216_vm1, %v876_v20  ;;  %v872_v22 = vpop.permute.xlu1 %871  ;;  %v870_v23 = vpop.permute.xlu0 %869 }
 0x9fe   :  { %1933 = vmatprep.subr.msk.mxu1 %vm216_vm1, %v874_v21 }
 0xa01   :  { %1934 = vmatpush3.xpose.msk.msra.mxu1 %vm216_vm1, %v874_v21  ;;  %v868_v25 = vpop.permute.xlu1 %867 }
 0xa02   :  { %1935 = vmatprep.subr.msk.mxu1 %vm216_vm1, %v872_v22 }
 0xa05   :  { %1936 = vmatpush3.xpose.msk.msra.mxu1 %vm216_vm1, %v872_v22 }
 0xa06   :  { %1937 = vmatprep.subr.msk.mxu1 %vm216_vm1, %v870_v23 }
 0xa09   :  { %1938 = vmatpush3.xpose.msk.msra.mxu1 %vm216_vm1, %v870_v23 }
 0xa0a   :  { %1939 = vmatprep.subr.msk.mxu1 %vm216_vm1, %v868_v25 }
 0xa0d   :  { %1940 = vmatpush3.xpose.msk.msra.mxu1 %vm216_vm1, %v868_v25 }
 0xa10   :  { %1942 = vmatmul.mubr.msk.f32.vlgmr.msra.gmra.mxu1 %vm216_vm1, %v2476_v7 }
 0xa11   :  { %1944 = vmatprep.mubr.msk.f32.mxu1 %vm216_vm1, %v2514_v15 }
 0xa14   :  { %1945 = vmatmul.mubr.msk.f32.gmra.mxu1 %vm216_vm1, %v2506_v12 }
 0xa15   :  { %1947 = vmatprep.mubr.msk.f32.mxu1 %vm216_vm1, %v2508_v13 }
 0xa18   :  { %1948 = vmatmul.mubr.msk.f32.gmra.mxu1 %vm216_vm1, %v2502_v11 }
 0xa19   :  { %1950 = vmatprep.mubr.msk.f32.mxu1 %vm216_vm1, %v2498_v10 }
 0xa1c   :  { %1951 = vmatmul.mubr.msk.f32.gmra.mxu1 %vm216_vm1, %v2494_v9 }
 0xad0   :  { %v1943_v26 = vpop.f32.mrf.mxu1 }
 0xad1   :  { %v1021_v28 = vsel %vm2309_vm2, %v1943_v26, -1e+30 }
 0xad2   :  { %v981_v29 = vpop.f32.mrf.mxu1  ;;  %v1031_v30 = vsel %vm362_vm3, %v1021_v28, -inf }
 0xad3   :  { %v1020_v31 = vsel %vm2313_vm4, %v981_v29, -1e+30  ;;  %1032 = vmax.xlane.f32.xlu1 %v1031_v30 }
 0xad4   :  { %v1946_v42 = vpop.f32.mrf.mxu1  ;;  %v1028_v44 = vsel %vm362_vm3, %v1020_v31, -inf }
 0xad5   :  { %v1023_v45 = vsel %vm2319_vm5, %v1946_v42, -1e+30  ;;  %1029 = vmax.xlane.f32.xlu0 %v1028_v44 }
 0xad6   :  { %v991_v46 = vpop.f32.mrf.mxu1  ;;  %v1037_v48 = vsel %vm362_vm3, %v1023_v45, -inf }
 0xad7   :  { %v1022_v60 = vsel %vm2329_vm6, %v991_v46, -1e+30 }
 0xad8   :  { %v1949_v47 = vpop.f32.mrf.mxu1  ;;  %v1034_v3 = vsel %vm362_vm3, %v1022_v60, -inf }
 0xad9   :  { %v1025_v49 = vsel %vm2333_vm7, %v1949_v47, -1e+30  ;;  %1038 = vmax.xlane.f32.xlu0 %v1037_v48 }
 0xada   :  { %v1001_v63 = vpop.f32.mrf.mxu1  ;;  %v1043_v50 = vsel %vm362_vm3, %v1025_v49, -inf }
 0xadb   :  { %1044 = vmax.xlane.f32.xlu1 %v1043_v50  ;;  %v1024_v34 = vsel %vm2342_vm8, %v1001_v63, -1e+30 }
 0xadc   :  { %v1952_v1 = vpop.f32.mrf.mxu1  ;;  %v1040_v16 = vsel %vm362_vm3, %v1024_v34, -inf }
 0xadd   :  { %v1027_v0 = vsel %vm2347_vm9, %v1952_v1, -1e+30  ;;  %1035 = vmax.xlane.f32.xlu0 %v1034_v3 }
 0xade   :  { %v1011_v14 = vpop.f32.mrf.mxu1  ;;  %v1049_v35 = vsel %vm362_vm3, %v1027_v0, -inf }
 0xadf   :  { %1050 = vmax.xlane.f32.xlu1 %v1049_v35  ;;  %v1026_v37 = vsel %vm2356_vm10, %v1011_v14, -1e+30 }
 0xae0   :  { %v1046_v51 = vsel %vm362_vm3, %v1026_v37, -inf }
 0xae1   :  { %1041 = vmax.xlane.f32.xlu0 %v1040_v16 }
 0xae5   :  { %1047 = vmax.xlane.f32.xlu0 %v1046_v51 }
 0xaf0   :  { %1128 = vrot.lane.b32.xlu1 %v2498_v10, %s2154_s16 }
 0xaf4   :  { %1126 = vrot.lane.b32.xlu1 %v2502_v11, %s2154_s16 }
 0xaf8   :  { %1124 = vrot.lane.b32.xlu1 %v2508_v13, %s2154_s16 }
 0xafb   :  { %1130 = vrot.lane.b32.xlu0 %v2494_v9, %s2154_s16 }
 0xafc   :  { %1120 = vrot.lane.b32.xlu1 %v2514_v15, %s2154_s16 }
 0xaff   :  { %1122 = vrot.lane.b32.xlu0 %v2506_v12, %s2154_s16 }
 0xb5c   :  { %v1033_v24 = vpop.xlane.xlu1 %1032 }
 0xb5d   :  { %v1053_v27 = vsub.f32 %v1021_v28, %v1033_v24 }
 0xb5e   :  { %v1030_v33 = vpop.xlane.xlu0 %1029 }
 0xb5f   :  { %v1062_v38 = vmul.f32 1.442695, %v1053_v27  ;;  %v1052_v52 = vsub.f32 %v1020_v31, %v1030_v33 }
 0xb61   :  { %2088 = vpow2.f32 %v1062_v38  ;;  %v1060_v40 = vmul.f32 1.442695, %v1052_v52 }
 0xb62   :  { %v1039_v53 = vpop.xlane.xlu0 %1038 }
 0xb63   :  { %2090 = vpow2.f32 %v1060_v40  ;;  %v1055_v54 = vsub.f32 %v1023_v45, %v1039_v53 }
 0xb64   :  { %v1045_v36 = vpop.xlane.xlu1 %1044 }
 0xb65   :  { %v1066_v55 = vmul.f32 1.442695, %v1055_v54  ;;  %v1057_v41 = vsub.f32 %v1025_v49, %v1045_v36 }
 0xb66   :  { %v1036_v56 = vpop.xlane.xlu0 %1035 }
 0xb67   :  { %2092 = vpow2.f32 %v1066_v55  ;;  %v1070_v39 = vmul.f32 1.442695, %v1057_v41  ;;  %v1054_v57 = vsub.f32 %v1022_v60, %v1036_v56  ;;  %v770_v41 = vld [vmem:[%s2752_s2 + $0x38] sm:$0xff]  ;;  %v769_v56 = vld [vmem:[%s2752_s2 + $0x30] sm:$0xff] }
 0xb68   :  { %v1051_v58 = vpop.xlane.xlu1 %1050 }
 0xb69   :  { %2094 = vpow2.f32 %v1070_v39  ;;  %v1064_v59 = vmul.f32 1.442695, %v1054_v57  ;;  %v1059_v61 = vsub.f32 %v1027_v0, %v1051_v58  ;;  %v768_v39 = vld [vmem:[%s2752_s2 + $0x28] sm:$0xff]  ;;  %v767_v58 = vld [vmem:[%s2752_s2 + $0x20] sm:$0xff] }
 0xb6a   :  { %v1042_v62 = vpop.xlane.xlu0 %1041 }
 0xb6b   :  { %2096 = vpow2.f32 %v1064_v59  ;;  %v1074_v2 = vmul.f32 1.442695, %v1059_v61  ;;  %v1056_v4 = vsub.f32 %v1024_v34, %v1042_v62 }
 0xb6c   :  { %v1129_v5 = vpop.permute.xlu1 %1128 }
 0xb6d   :  { %2098 = vpow2.f32 %v1074_v2  ;;  %v1068_v6 = vmul.f32 1.442695, %v1056_v4 }
 0xb6e   :  { %v2588_v9 = vpop.eup %2088  ;;  %v1048_v10 = vpop.xlane.xlu0 %1047 }
 0xb6f   :  { %2100 = vpow2.f32 %v1068_v6  ;;  %v1058_v11 = vsub.f32 %v1026_v37, %v1048_v10  ;;  %v1079_v12 = vsel %vm362_vm3, %v2588_v9, 0.0 }
 0xb70   :  { %v2091_v13 = vpop.eup %2090  ;;  %1080 = vadd.xlane.f32.xlu1 %v1079_v12  ;;  %v1127_v17 = vpop.permute.xlu1 %1126 }
 0xb71   :  { %v1072_v15 = vmul.f32 1.442695, %v1058_v11  ;;  %v1076_v18 = vsel %vm362_vm3, %v2091_v13, 0.0 }
 0xb72   :  { %1077 = vadd.xlane.f32.xlu0 %v1076_v18  ;;  %v1131_v19 = vpop.permute.xlu0 %1130 }
 0xb73   :  { %2102 = vpow2.f32 %v1072_v15  ;;  %1953 = vmatprep.subr.mxu0 %v1131_v19 }
 0xb74   :  { %v2593_v20 = vpop.eup %2092  ;;  %1954 = vmatpush3.msra.mxu0 %v1131_v19  ;;  %v1125_v23 = vpop.permute.xlu1 %1124 }
 0xb75   :  { %1955 = vmatprep.subr.mxu0 %v1129_v5  ;;  %v1085_v21 = vsel %vm362_vm3, %v2593_v20, 0.0 }
 0xb76   :  { %v2597_v22 = vpop.eup %2094  ;;  %1086 = vadd.xlane.f32.xlu1 %v1085_v21  ;;  %1956 = vmatpush3.msra.mxu0 %v1129_v5  ;;  %v1123_v30 = vpop.permute.xlu0 %1122 }
 0xb77   :  { %1957 = vmatprep.subr.mxu0 %v1127_v17  ;;  %v1091_v26 = vsel %vm362_vm3, %v2597_v22, 0.0 }
 0xb78   :  { %v2097_v25 = vpop.eup %2096  ;;  %1958 = vmatpush3.msra.mxu0 %v1127_v17  ;;  %v1121_v42 = vpop.permute.xlu1 %1120 }
 0xb79   :  { %1959 = vmatprep.subr.mxu0 %v1125_v23  ;;  %v1082_v28 = vsel %vm362_vm3, %v2097_v25, 0.0 }
 0xb7a   :  { %v2602_v29 = vpop.eup %2098  ;;  %1092 = vadd.xlane.f32.xlu1 %v1091_v26  ;;  %1083 = vadd.xlane.f32.xlu0 %v1082_v28 }
 0xb7b   :  { %1960 = vmatpush3.msra.mxu0 %v1125_v23  ;;  %v1097_v44 = vsel %vm362_vm3, %v2602_v29, 0.0  ;;  %v1715_v23 = vld [vmem:[%s2752_s2 + $0x41] ss:$0 sm:$0xff] }
 0xb7c   :  { %v2101_v31 = vpop.eup %2100  ;;  %1961 = vmatprep.subr.mxu0 %v1123_v30 }
 0xb7d   :  { %1962 = vmatpush3.msra.mxu0 %v1123_v30  ;;  %v1088_v45 = vsel %vm362_vm3, %v2101_v31, 0.0 }
 0xb7e   :  { %1963 = vmatprep.subr.mxu0 %v1121_v42  ;;  %1098 = vadd.xlane.f32.xlu1 %v1097_v44 }
 0xb7f   :  { %1089 = vadd.xlane.f32.xlu0 %v1088_v45  ;;  %1964 = vmatpush3.msra.mxu0 %v1121_v42 }
 0xb80   :  { %v2103_v46 = vpop.eup %2102 }
 0xb81   :  { %v1094_v47 = vsel %vm362_vm3, %v2103_v46, 0.0 }
 0xb83   :  { %1095 = vadd.xlane.f32.xlu0 %v1094_v47 }
 0xb8f   :  { %1116 = vrot.lane.b32.xlu1 %v2480_v8, %s2154_s16 }
 0xb99   :  { %1118 = vrot.lane.b32.xlu0 %v2476_v7, %s2154_s16 }
 0xbf9   :  { %v1081_v60 = vpop.xlane.xlu1 %1080 }
 0xbfb   :  { %v1078_v48 = vpop.xlane.xlu0 %1077 }
 0xbfc   :  { %2104 = vrcp.f32 %v1078_v48 }
 0xbfd   :  { %2106 = vrcp.f32 %v1081_v60 }
 0xbff   :  { %v1087_v49 = vpop.xlane.xlu1 %1086 }
 0xc03   :  { %v1084_v63 = vpop.xlane.xlu0 %1083  ;;  %v1093_v50 = vpop.xlane.xlu1 %1092 }
 0xc04   :  { %2108 = vrcp.f32 %v1084_v63 }
 0xc05   :  { %2110 = vrcp.f32 %v1087_v49 }
 0xc07   :  { %v1099_v0 = vpop.xlane.xlu1 %1098 }
 0xc08   :  { %v1090_v1 = vpop.xlane.xlu0 %1089 }
 0xc09   :  { %v2105_v3 = vpop.eup %2104  ;;  %2112 = vrcp.f32 %v1090_v1  ;;  %v1429_v1 = vld [vmem:[%s2753_s3 + $0x18] sm:$0xff] }
 0xc0a   :  { %v1108_v34 = vmul.f32 %v2105_v3, %v2091_v13  ;;  %2114 = vrcp.f32 %v1093_v50  ;;  %v2107_v7 = vpop.eup %2106  ;;  %v1428_v3 = vld [vmem:[%s2753_s3 + $0x10] sm:$0xff]  ;;  %1992 = vmatprep.subr.mxu1 %v1429_v1 }
 0xc0b   :  { %v1117_v16 = vpop.permute.xlu1 %1116  ;;  %v1109_v37 = vmul.f32 %v2107_v7, %v2588_v9  ;;  %1993 = vmatpush3.msra.mxu1 %v1429_v1  ;;  %v1540_v7 = vld [vmem:[%s2754_s4 + $0x70] sm:$0xff] }
 0xc0c   :  { %v1096_v14 = vpop.xlane.xlu0 %1095  ;;  %1969 = vmatprep.mubr.msk.f32.mxu0 %vm362_vm3, %v1108_v34  ;;  %v1427_v34 = vld [vmem:[%s2753_s3 + $0x8] sm:$0xff]  ;;  %1994 = vmatprep.subr.mxu1 %v1428_v3 }
 0xc0d   :  { %2116 = vrcp.f32 %v1096_v14  ;;  %1995 = vmatpush3.msra.mxu1 %v1428_v3  ;;  %v1541_v14 = vld [vmem:[%s2754_s4 + $0x78] sm:$0xff] }
 0xc0e   :  { %2118 = vrcp.f32 %v1099_v0  ;;  %v1426_v0 = vld [vmem:[%s2753_s3] sm:$0xff]  ;;  %1996 = vmatprep.subr.mxu1 %v1427_v34 }
 0xc0f   :  { %1997 = vmatpush3.msra.mxu1 %v1427_v34 }
 0xc10   :  { %v1119_v8 = vpop.permute.xlu0 %1118  ;;  %1998 = vmatprep.subr.mxu1 %v1426_v0 }
 0xc11   :  { %1965 = vmatprep.subr.mxu0 %v1119_v8  ;;  %v2109_v35 = vpop.eup %2108  ;;  %1999 = vmatpush3.msra.mxu1 %v1426_v0 }
 0xc12   :  { %1966 = vmatpush3.msra.mxu0 %v1119_v8  ;;  %v1110_v51 = vmul.f32 %v2109_v35, %v2097_v25  ;;  %v2111_v24 = vpop.eup %2110  ;;  %v1539_v8 = vld [vmem:[%s2754_s4 + $0x68] sm:$0xff] }
 0xc13   :  { %1967 = vmatprep.subr.mxu0 %v1117_v16  ;;  %v1111_v33 = vmul.f32 %v2111_v24, %v2593_v20 }
 0xc14   :  { %1968 = vmatpush3.msra.mxu0 %v1117_v16 }
 0xc15   :  { %1970 = vmatmul.mubr.msk.f32.vlgmr.msra.gmra.mxu0 %vm362_vm3, %v1109_v37  ;;  %1981 = vmatprep.subr.mxu0 %v770_v41 }
 0xc16   :  { %v2113_v27 = vpop.eup %2112  ;;  %1972 = vmatprep.mubr.msk.f32.mxu0 %vm362_vm3, %v1110_v51  ;;  %1982 = vmatpush3.msra.mxu0 %v770_v41 }
 0xc17   :  { %v1112_v38 = vmul.f32 %v2113_v27, %v2101_v31  ;;  %v2115_v52 = vpop.eup %2114  ;;  %1983 = vmatprep.subr.mxu0 %v769_v56 }
 0xc18   :  { %v1113_v53 = vmul.f32 %v2115_v52, %v2597_v22  ;;  %1984 = vmatpush3.msra.mxu0 %v769_v56 }
 0xc19   :  { %1973 = vmatmul.mubr.msk.f32.gmra.mxu0 %vm362_vm3, %v1111_v33  ;;  %1985 = vmatprep.subr.mxu0 %v768_v39 }
 0xc1a   :  { %v2117_v40 = vpop.eup %2116  ;;  %1975 = vmatprep.mubr.msk.f32.mxu0 %vm362_vm3, %v1112_v38  ;;  %1986 = vmatpush3.msra.mxu0 %v768_v39  ;;  %v1718_v38 = vld [vmem:[%s2755_s5 + $0x4] ss:$0 sm:$0xff] }
 0xc1b   :  { %v1114_v54 = vmul.f32 %v2117_v40, %v2103_v46  ;;  %v2119_v36 = vpop.eup %2118  ;;  %1987 = vmatprep.subr.mxu0 %v767_v58  ;;  %v1719_v40 = vld [vmem:[%s2755_s5 + $0x5] ss:$0 sm:$0xff]  ;;  %s2159_s5 = smov [#allocation2]  }
 0xc1c   :  { %v1115_v55 = vmul.f32 %v2119_v36, %v2602_v29  ;;  %1988 = vmatpush3.msra.mxu0 %v767_v58  ;;  %v1538_v39 = vld [vmem:[%s2754_s4 + $0x60] sm:$0xff]  ;;  %v1536_v58 = vld [vmem:[%s2754_s4 + $0x50] sm:$0xff]  ;;  %s1648_s27 = sshll.u32 %s2159_s5, 4  ;;  %s1649_s27 = int_to_ptr.vmem [resolvable:$true] %s1648_s27 }
 0xc1d   :  { %1976 = vmatmul.mubr.msk.f32.gmra.mxu0 %vm362_vm3, %v1113_v53  ;;  %2003 = vmatprep.subr.mxu0 %v1541_v14  ;;  %p2133_p1 = scmp.lt.s32.totalorder %s1649_s27, %s1649_s27 }
 0xc1e   :  { %1978 = vmatprep.mubr.msk.f32.mxu0 %vm362_vm3, %v1114_v54 }
 0xc21   :  { %1979 = vmatmul.mubr.msk.f32.gmra.mxu0 %vm362_vm3, %v1115_v55 }
 0xcd5   :  { %v1971_v57 = vpop.f32.mrf.mxu0 }
 0xcd7   :  { %v1230_v59 = vpop.f32.mrf.mxu0 }
 0xcd9   :  { %v1974_v61 = vpop.f32.mrf.mxu0 }
 0xcda   :  { %1273 = vrot.lane.b32.xlu1 %v1974_v61, %s2155_s0  ;;  %v1534_v61 = vld [vmem:[%s2754_s4 + $0x40] sm:$0xff] }
 0xcdb   :  { %v1240_v62 = vpop.f32.mrf.mxu0 }
 0xcdc   :  { %1271 = vrot.lane.b32.xlu0 %v1240_v62, %s2155_s0  ;;  %v1533_v62 = vld [vmem:[%s2754_s4 + $0x38] sm:$0xff] }
 0xcdd   :  { %v1977_v2 = vpop.f32.mrf.mxu0 }
 0xcde   :  { %1281 = vrot.lane.b32.xlu1 %v1977_v2, %s2156_s25  ;;  %v1532_v2 = vld [vmem:[%s2754_s4 + $0x30] sm:$0xff] }
 0xcdf   :  { %v1250_v4 = vpop.f32.mrf.mxu0 }
 0xce0   :  { %1279 = vrot.lane.b32.xlu0 %v1250_v4, %s2156_s25  ;;  %v1531_v4 = vld [vmem:[%s2754_s4 + $0x28] sm:$0xff] }
 0xce1   :  { %v1980_v5 = vpop.f32.mrf.mxu0 }
 0xce2   :  { %1289 = vrot.lane.b32.xlu1 %v1980_v5, %s2157_s26  ;;  %v1530_v5 = vld [vmem:[%s2754_s4 + $0x20] sm:$0xff] }
 0xce3   :  { %v1260_v6 = vpop.f32.mrf.mxu0 }
 0xce4   :  { %1287 = vrot.lane.b32.xlu0 %v1260_v6, %s2157_s26  ;;  %v1529_v6 = vld [vmem:[%s2754_s4 + $0x18] sm:$0xff] }
 0xd4c   :  { %v1274_v9 = vpop.permute.xlu1 %1273 }
 0xd4d   :  { %v1294_v17 = vsel %vm216_vm1, %v1971_v57, %v1274_v9  ;;  %v1537_v57 = vld [vmem:[%s2754_s4 + $0x58] sm:$0xff]  ;;  %v1528_v9 = vld [vmem:[%s2754_s4 + $0x10] sm:$0xff] }
 0xd4e   :  { %v1272_v10 = vpop.permute.xlu0 %1271 }
 0xd4f   :  { %v1293_v13 = vsel %vm216_vm1, %v1230_v59, %v1272_v10  ;;  %v1535_v59 = vld [vmem:[%s2754_s4 + $0x48] sm:$0xff] }
 0xd50   :  { %v1282_v11 = vpop.permute.xlu1 %1281  ;;  %v1527_v10 = vld [vmem:[%s2754_s4 + $0x8] sm:$0xff] }
 0xd51   :  { %v1296_v20 = vsel %vm630_vm11, %v1294_v17, %v1282_v11  ;;  %v1526_v11 = vld [vmem:[%s2754_s4] sm:$0xff] }
 0xd52   :  { %v1280_v12 = vpop.permute.xlu0 %1279 }
 0xd53   :  { %v1295_v18 = vsel %vm630_vm11, %v1293_v13, %v1280_v12  ;;  %v1720_v12 = vld [vmem:[%s2753_s3 + $0x20] ss:$0 sm:$0xff] }
 0xd54   :  { %v1290_v15 = vpop.permute.xlu1 %1289 }
 0xd55   :  { %v1298_v22 = vsel %vm633_vm12, %v1296_v20, %v1290_v15 }
 0xd56   :  { %v1288_v19 = vpop.permute.xlu0 %1287 }
 0xd57   :  { %v1297_v21 = vsel %vm633_vm12, %v1295_v18, %v1288_v19 }
 0xd58   :  { %1989 = vmatprep.mubr.msk.f32.mxu0 %vm56_vm0, %v1297_v21 }
 0xd59   :  { %1990 = vmatmul.mubr.msk.f32.vlgmr.msra.gmra.mxu0 %vm56_vm0, %v1298_v22 }
 0xd5a   :  { %2004 = vmatpush3.msra.mxu0 %v1541_v14 }
 0xd5b   :  { %2005 = vmatprep.subr.mxu0 %v1540_v7 }
 0xd5c   :  { %2006 = vmatpush3.msra.mxu0 %v1540_v7 }
 0xd5d   :  { %2007 = vmatprep.subr.mxu0 %v1539_v8 }
 0xd5e   :  { %2008 = vmatpush3.msra.mxu0 %v1539_v8 }
 0xd5f   :  { %2009 = vmatprep.subr.mxu0 %v1538_v39 }
 0xd60   :  { %2010 = vmatpush3.msra.mxu0 %v1538_v39 }
 0xd61   :  { %2011 = vmatprep.subr.mxu0 %v1537_v57 }
 0xd62   :  { %2012 = vmatpush3.msra.mxu0 %v1537_v57 }
 0xd63   :  { %2013 = vmatprep.subr.mxu0 %v1536_v58 }
 0xd64   :  { %2014 = vmatpush3.msra.mxu0 %v1536_v58 }
 0xd65   :  { %2015 = vmatprep.subr.mxu0 %v1535_v59 }
 0xd66   :  { %2016 = vmatpush3.msra.mxu0 %v1535_v59 }
 0xd67   :  { %2017 = vmatprep.subr.mxu0 %v1534_v61 }
 0xd68   :  { %2018 = vmatpush3.msra.mxu0 %v1534_v61 }
 0xd69   :  { %2019 = vmatprep.subr.mxu0 %v1533_v62 }
 0xd6a   :  { %2020 = vmatpush3.msra.mxu0 %v1533_v62 }
 0xd6b   :  { %2021 = vmatprep.subr.mxu0 %v1532_v2 }
 0xd6c   :  { %2022 = vmatpush3.msra.mxu0 %v1532_v2 }
 0xd6d   :  { %2023 = vmatprep.subr.mxu0 %v1531_v4 }
 0xd6e   :  { %2024 = vmatpush3.msra.mxu0 %v1531_v4 }
 0xd6f   :  { %2025 = vmatprep.subr.mxu0 %v1530_v5 }
 0xd70   :  { %2026 = vmatpush3.msra.mxu0 %v1530_v5 }
 0xd71   :  { %2027 = vmatprep.subr.mxu0 %v1529_v6 }
 0xd72   :  { %2028 = vmatpush3.msra.mxu0 %v1529_v6 }
 0xd73   :  { %2029 = vmatprep.subr.mxu0 %v1528_v9 }
 0xd74   :  { %2030 = vmatpush3.msra.mxu0 %v1528_v9 }
 0xd75   :  { %2031 = vmatprep.subr.mxu0 %v1527_v10 }
 0xd76   :  { %2032 = vmatpush3.msra.mxu0 %v1527_v10 }
 0xd77   :  { %2033 = vmatprep.subr.mxu0 %v1526_v11 }
 0xd78   :  { %2034 = vmatpush3.msra.mxu0 %v1526_v11 }
 0xe19   :  { %v1991_v25 = vpop.f32.mrf.mxu0 }
 0xe1a   :  { %v1381_v26 = vadd.f32 %v1991_v25, %v1715_v23 }
 0xe1b   :  { %v1375_v28 = vpop.f32.mrf.mxu0 }
 0xe1c   :  { %v2654_v29 = vadd.f32 %v1381_v26, %v2443_v32  ;;  %v1376_v30 = vadd.f32 %v1715_v23, %v1375_v28 }
 0xe1e   :  { %v2657_v31 = vadd.f32 %v1376_v30, %v2446_v43  ;;  %v1391_v42 = vsel %vm56_vm0, %v2654_v29, 0.0 }
 0xe1f   :  { %1392 = vadd.xlane.f32.xlu1 %v1391_v42 }
 0xe20   :  { %v1388_v44 = vsel %vm56_vm0, %v2657_v31, 0.0 }
 0xe21   :  { %1389 = vadd.xlane.f32.xlu0 %v1388_v44  ;;  %v1723_v44 = vld [vmem:[%s2754_s4 + $0x80] ss:$0 sm:$0xff]  ;;  %s2128_s4 = scalar_lea.vmem %s1649_s27, 64 }
 0xe22   :  { %p2129_p0 = scmp.ne.s32.totalorder %s1649_s27, %s2128_s4  ;;  %p2134_p2 = scmp.lt.s32.totalorder %s2128_s4, %s2128_s4 }
 0xe24   :  { %p2135_p3 = por %p2134_p2, %p2133_p1 }
 0xe26   :  { %p2136_p4 = pnand %p2135_p3, %p2129_p0 }
 0xea8   :  { %v1393_v45 = vpop.xlane.xlu1 %1392 }
 0xea9   :  { %v1395_v46 = vmul.f32 0.03125, %v1393_v45 }
 0xeaa   :  { %v1390_v47 = vpop.xlane.xlu0 %1389 }
 0xeab   :  { %v1394_v48 = vmul.f32 0.03125, %v1390_v47  ;;  %v1397_v60 = vsub.f32 %v2654_v29, %v1395_v46 }
 0xead   :  { %v1396_v32 = vsub.f32 %v2657_v31, %v1394_v48  ;;  %v1399_v63 = vmul.f32 %v1397_v60, %v1397_v60 }
 0xeaf   :  { %v1398_v49 = vmul.f32 %v1396_v32, %v1396_v32  ;;  %v1403_v50 = vsel %vm56_vm0, %v1399_v63, 0.0 }
 0xeb1   :  { %v1400_v43 = vsel %vm56_vm0, %v1398_v49, 0.0 }
 0xeb2   :  { %1401 = vadd.xlane.f32.xlu0 %v1400_v43 }
 0xeb6   :  { %1404 = vadd.xlane.f32.xlu0 %v1403_v50 }
 0xf3b   :  { %v1402_v35 = vpop.xlane.xlu0 %1401 }
 0xf3c   :  { %v1406_v16 = vmul.f32 0.03125, %v1402_v35 }
 0xf3e   :  { %v1408_v37 = vadd.f32 1e-05, %v1406_v16 }
 0xf3f   :  { %v1405_v51 = vpop.xlane.xlu0 %1404 }
 0xf40   :  { %2120 = vrsqrt.f32 %v1408_v37  ;;  %v1407_v24 = vmul.f32 0.03125, %v1405_v51 }
 0xf42   :  { %v1409_v27 = vadd.f32 1e-05, %v1407_v24 }
 0xf44   :  { %2122 = vrsqrt.f32 %v1409_v27 }
 0xf4d   :  { %v2121_v33 = vpop.eup %2120 }
 0xf4e   :  { %v1412_v52 = vmul.f32 %v2121_v33, %v1396_v32 }
 0xf50   :  { %v1418_v53 = vmul.f32 %v1718_v38, %v1412_v52 }
 0xf51   :  { %v2123_v54 = vpop.eup %2122 }
 0xf52   :  { %v1413_v36 = vmul.f32 %v2123_v54, %v1397_v60  ;;  %v1424_v55 = vadd.f32 %v1719_v40, %v1418_v53 }
 0xf54   :  { %v1419_v41 = vmul.f32 %v1718_v38, %v1413_v36  ;;  %2000 = vmatprep.mubr.msk.f32.mxu1 %vm56_vm0, %v1424_v55 }
 0xf56   :  { %v1425_v56 = vadd.f32 %v1719_v40, %v1419_v41 }
 0xf58   :  { %2001 = vmatmul.mubr.msk.f32.vlgmr.msra.gmra.mxu1 %vm56_vm0, %v1425_v56 }
0x1018   :  { %v2002_v13 = vpop.f32.mrf.mxu1 }
0x1019   :  { %v1513_v15 = vadd.f32 %v2002_v13, %v1720_v12 }
0x101a   :  { %v1507_v17 = vpop.f32.mrf.mxu1 }
0x101b   :  { %v1519_v18 = vmul.f32 0.70710677, %v1513_v15  ;;  %v1508_v19 = vadd.f32 %v1720_v12, %v1507_v17  ;;  %v1517_v28 = vmul.f32 0.5, %v1513_v15 }
0x101d   :  { %2124 = verf.f32 %v1519_v18  ;;  %v1518_v20 = vmul.f32 0.70710677, %v1508_v19  ;;  %v1516_v25 = vmul.f32 0.5, %v1508_v19 }
0x101f   :  { %2126 = verf.f32 %v1518_v20 }
0x102a   :  { %v2125_v21 = vpop.eup %2124 }
0x102b   :  { %v1523_v23 = vadd.f32 1.0, %v2125_v21 }
0x102c   :  { %v2127_v22 = vpop.eup %2126 }
0x102d   :  { %v1522_v26 = vadd.f32 1.0, %v2127_v22  ;;  %v1525_v42 = vmul.f32 %v1523_v23, %v1517_v28 }
0x102f   :  { %v1524_v30 = vmul.f32 %v1522_v26, %v1516_v25 }
0x1031   :  { %2035 = vmatprep.mubr.f32.mxu0 %v1524_v30 }
0x1032   :  { %2036 = vmatmul.mubr.f32.vlgmr.msra.gmra.mxu0 %v1525_v42 }
0x10f2   :  { %v2037_v45 = vpop.f32.mrf.mxu0 }
0x10f3   :  { %v1619_v46 = vadd.f32 %v2037_v45, %v1723_v44 }
0x10f4   :  { %v1613_v47 = vpop.f32.mrf.mxu0 }
0x10f5   :  { %v1623_v48 = vadd.f32 %v1619_v46, %v2654_v29  ;;  %v1614_v60 = vadd.f32 %v1723_v44, %v1613_v47 }
0x10f7   :  { %v1622_v32 = vadd.f32 %v1614_v60, %v2657_v31  ;;  %1630 = vrot.lane.b32.xlu1 %v1623_v48, %s2154_s16  ;;  %v1633_v49 = vrot.slane %v1623_v48, 4 }
0x10f9   :  { %v1625_v43 = vrot.slane %v1622_v32, 4 }
0x10fb   :  { %1634 = vrot.lane.b32.xlu1 %v1633_v49, %s2153_s15  ;;  %1626 = vrot.lane.b32.xlu0 %v1625_v43, %s2158_s24 }
0x1169   :  { %v1631_v63 = vpop.permute.xlu1 %1630 }
0x116d   :  { %v1627_v50 = vpop.permute.xlu0 %1626  ;;  %v1635_v3 = vpop.permute.xlu1 %1634 }
0x116e   :  { %v1637_v1 = vsel %vm56_vm0, %v1622_v32, %v1627_v50 }
0x116f   :  { %v1638_v29 = vsel %vm362_vm3, %v1637_v1, %v1631_v63 }
0x1170   :  { %v1640_v31 = vsel %vm1639_vm13, %v1638_v29, %v1635_v3 }
0x1171   :  { %1641 = vst [vmem:[#allocation2] sm:$0xf] %v1640_v31 }
0x1172   :  { %2139 = shalt.err (!%p2136_p4)
}
0x1173   :  { %1651 = dma.vmem_to_hbm [thread:$0]  %s1649_s27, 64, %s2756_s6, [#allocation3]  }
0x1174   :  { %2148 = dma.done.wait [#allocation3], 64  }
0x1175   :  { %2149 = vsyncadd [#allocation3], 4294967232 }
0x1176   :  { %1655 = vsyncpa [#allocation3], 1 }

</bundles_post_ra>
